<compile_context>
chip_gen: v7x
topology: tpu7x:2x2x1
jax: 0.10.0
libtpu: 0.0.40
codegen_flags: <defaults>
</compile_context>

<pallas_src>
import math

import jax
import jax.numpy as jnp
from jax.experimental import pallas as pl
from jax.experimental.pallas import tpu as pltpu


# ----------------------------- Pallas kernel ------------------------------- #
def _explain_graph_kernel(masks_ref, wadj_ref, feat_ref, w1_ref, w2_ref,
                          madj_ref, pred_ref):
    # masks_ref: (2, BB, N, N) — [0] = adj_mask, [1] = adj_mask^T per example.
    _, BB, N, _ = masks_ref.shape
    F = feat_ref.shape[-1]
    H = w1_ref.shape[-1]
    C = w2_ref.shape[-1]

    # get_masked_adj():
    #   sym = sigmoid(adj_mask); sym = (sym + sym.T) / 2
    #   masked_adj = edata['weight'] * flatten(sym)
    # Single EUP pass over the stacked (mask, mask^T) slab.
    sig_both = pl.reciprocal(1.0 + jnp.exp(-masks_ref[...]), approx=True)
    sym = 0.5 * (sig_both[0] + sig_both[1])          # (BB, N, N)

    wadj = wadj_ref[...]
    a1 = wadj * sym          # masked_adj
    a2 = wadj - a1           # weight - masked_adj (value-level, no ref dep)
    madj_ref[...] = a1

    # Shared first-layer feature transform: one (BB*N, F) @ (F, H) MXU matmul,
    # reused by both GCN branches.
    xw1 = jnp.dot(feat_ref[...].reshape(BB * N, F), w1_ref[...],
                  preferred_element_type=jnp.float32).reshape(BB, N, H)

    # Stack the two adjacency branches along the batch axis so each stage is a
    # single (wider) matmul instead of two half-size ones.
    a_both = jnp.concatenate([a1, a2], axis=0)            # (2*BB, N, N)
    xw1_both = jnp.concatenate([xw1, xw1], axis=0)        # (2*BB, N, H)

    # h = relu(A @ (X @ W1));  out = A @ (h @ W2)   (re-associated second layer)
    h = jnp.maximum(
        jnp.einsum('bij,bjh->bih', a_both, xw1_both,
                   preferred_element_type=jnp.float32), 0.0)
    hw2 = jnp.dot(h.reshape(2 * BB * N, H), w2_ref[...],
                  preferred_element_type=jnp.float32).reshape(2 * BB, N, C)
    out = jnp.einsum('bij,bjc->bic', a_both, hw2,
                     preferred_element_type=jnp.float32)   # (2*BB, N, C)

    # Leading-dim split only (no lane relayout): [0] = pred1, [1] = pred2.
    pred_ref[...] = out.reshape(2, BB, N, C)


# ------------------------------ wrapper ------------------------------------ #
def explain_model_graph_forward(adj_mask, edge_weight, feat, w1, w2, *, block_b=8):
    """Batched ExplainModelGraph forward.

    adj_mask:    (B, N, N) f32 learnable masks
    edge_weight: (B, N, N) f32 dense edge weights (flat edata['weight'] reshaped)
    feat:        (B, N, F) f32 node features
    w1:          (F, H) f32, w2: (H, C) f32 — shared base-model GCN weights

    Returns (pred1, pred2, masked_adj_flat) with shapes
    (B, N, C), (B, N, C), (B, N*N).
    """
    B, N, _ = adj_mask.shape
    F = feat.shape[-1]
    H = w1.shape[-1]
    C = w2.shape[-1]
    if B % block_b != 0:
        raise ValueError(f"batch {B} must be divisible by block_b {block_b}")

    # Stack the mask and its (per-example) transpose so the kernel never has to
    # transpose sub-vreg tiles on the XLU, and sigmoid runs once over both.
    masks = jnp.stack([adj_mask, jnp.swapaxes(adj_mask, 1, 2)], axis=0)

    madj, pred = pl.pallas_call(
        _explain_graph_kernel,
        out_shape=(
            jax.ShapeDtypeStruct((B, N, N), jnp.float32),
            jax.ShapeDtypeStruct((2, B, N, C), jnp.float32),
        ),
        grid=(B // block_b,),
        in_specs=[
            pl.BlockSpec((2, block_b, N, N), lambda i: (0, i, 0, 0)),
            pl.BlockSpec((block_b, N, N), lambda i: (i, 0, 0)),
            pl.BlockSpec((block_b, N, F), lambda i: (i, 0, 0)),
            pl.BlockSpec((F, H), lambda i: (0, 0)),
            pl.BlockSpec((H, C), lambda i: (0, 0)),
        ],
        out_specs=(
            pl.BlockSpec((block_b, N, N), lambda i: (i, 0, 0)),
            pl.BlockSpec((2, block_b, N, C), lambda i: (0, i, 0, 0)),
        ),
        compiler_params=pltpu.CompilerParams(
            dimension_semantics=("parallel",)),   # shards batch across TCs on v7x
    )(masks, edge_weight, feat, w1, w2)

    pred1 = pred[0]
    pred2 = pred[1]
    # masked_adj is a flat (N*N,) vector per example in the original module.
    return pred1, pred2, madj.reshape(B, N * N)


# -------------------------- pure-JAX reference ------------------------------ #
def _reference(adj_mask, edge_weight, feat, w1, w2):
    sym = jax.nn.sigmoid(adj_mask)
    sym = 0.5 * (sym + jnp.swapaxes(sym, -1, -2))
    masked_adj = edge_weight * sym

    def gcn(a):
        ax = jnp.einsum('bij,bjf->bif', a, feat)
        h = jnp.maximum(ax @ w1, 0.0)
        return jnp.einsum('bij,bjh->bih', a, h) @ w2

    return (gcn(masked_adj),
            gcn(edge_weight - masked_adj),
            masked_adj.reshape(masked_adj.shape[0], -1))


if __name__ == "__main__":
    B = 16   # batch of explainer instances
    N = 16   # num_nodes
    F = 32   # node feature dim
    H = 32   # GCN hidden dim
    C = 8    # GCN output dim

    key = jax.random.PRNGKey(0)
    k_mask, k_feat, k_w1, k_w2, k_adj = jax.random.split(key, 5)

    # construct_adj_mask(): normal(mean=1.0, std=gain('relu')*sqrt(2/(N+N)))
    std = math.sqrt(2.0) * math.sqrt(2.0 / (N + N))
    adj_mask = 1.0 + std * jax.random.normal(k_mask, (B, N, N), dtype=jnp.float32)

    # dense edge weights (edata['weight'] reshaped to (N, N)), non-negative
    edge_weight = jax.random.uniform(k_adj, (B, N, N), dtype=jnp.float32)

    feat = jax.random.normal(k_feat, (B, N, F), dtype=jnp.float32)
    w1 = (1.0 / math.sqrt(F)) * jax.random.normal(k_w1, (F, H), dtype=jnp.float32)
    w2 = (1.0 / math.sqrt(H)) * jax.random.normal(k_w2, (H, C), dtype=jnp.float32)

    pred1, pred2, masked_adj = explain_model_graph_forward(
        adj_mask, edge_weight, feat, w1, w2, block_b=8)
    jax.block_until_ready((pred1, pred2, masked_adj))

    r1, r2, rm = _reference(adj_mask, edge_weight, feat, w1, w2)
    # Tolerances relaxed for the approx EUP reciprocal in the in-kernel sigmoid.
    assert jnp.allclose(masked_adj, rm, atol=2e-3, rtol=2e-3)
    assert jnp.allclose(pred1, r1, atol=1e-2, rtol=1e-2)
    assert jnp.allclose(pred2, r2, atol=1e-2, rtol=1e-2)

    print("KERNEL_OK")
</pallas_src>

<mosaic_0001>
module attributes {stable_mosaic.version = 11 : i64} {
  func.func @_explain_graph_kernel(%arg0: i32, %arg1: memref<2x8x16x16xf32, #tpu.memory_space<vmem>>, %arg2: memref<8x16x16xf32, #tpu.memory_space<vmem>>, %arg3: memref<8x16x32xf32, #tpu.memory_space<vmem>>, %arg4: memref<32x32xf32, #tpu.memory_space<vmem>>, %arg5: memref<32x8xf32, #tpu.memory_space<vmem>>, %arg6: memref<8x16x16xf32, #tpu.memory_space<vmem>>, %arg7: memref<2x8x16x8xf32, #tpu.memory_space<vmem>>) attributes {dimension_semantics = [#tpu.dimension_semantics<parallel>], iteration_bounds = array<i64: 2>, scalar_prefetch = 0 : i64, scratch_operands = 0 : i64, tpu.core_type = #tpu.core_type<tc>, window_params = [{transform_indices = @transform_0, window_bounds = array<i64: 2, 8, 16, 16>}, {transform_indices = @transform_1, window_bounds = array<i64: 8, 16, 16>}, {transform_indices = @transform_2, window_bounds = array<i64: 8, 16, 32>}, {pipeline_mode = #tpu.pipeline_mode<synchronous>, transform_indices = @transform_3, window_bounds = array<i64: 32, 32>}, {pipeline_mode = #tpu.pipeline_mode<synchronous>, transform_indices = @transform_4, window_bounds = array<i64: 32, 8>}, {transform_indices = @transform_5, window_bounds = array<i64: 8, 16, 16>}, {transform_indices = @transform_6, window_bounds = array<i64: 2, 8, 16, 8>}]} {
    %c0 = arith.constant 0 : index
    %c0_0 = arith.constant 0 : index
    %c0_1 = arith.constant 0 : index
    %c0_2 = arith.constant 0 : index
    %0 = vector.load %arg1[%c0, %c0_0, %c0_1, %c0_2] : memref<2x8x16x16xf32, #tpu.memory_space<vmem>>, vector<2x8x16x16xf32>
    %cst = arith.constant 0.000000e+00 : f32
    %1 = vector.broadcast %cst : f32 to vector<2x8x16x16xf32>
    %2 = arith.subf %1, %0 : vector<2x8x16x16xf32>
    %3 = math.exp %2 : vector<2x8x16x16xf32>
    %cst_3 = arith.constant 1.000000e+00 : f32
    %4 = vector.broadcast %cst_3 : f32 to vector<2x8x16x16xf32>
    %5 = arith.addf %4, %3 : vector<2x8x16x16xf32>
    %6 = tpu.reciprocal %5 {approx = true} : vector<2x8x16x16xf32> -> vector<2x8x16x16xf32>
    %7 = vector.extract_strided_slice %6 {offsets = [0, 0, 0, 0], sizes = [1, 8, 16, 16], strides = [1, 1, 1, 1]} : vector<2x8x16x16xf32> to vector<1x8x16x16xf32>
    %8 = vector.shape_cast %7 : vector<1x8x16x16xf32> to vector<8x16x16xf32>
    %9 = vector.extract_strided_slice %6 {offsets = [1, 0, 0, 0], sizes = [1, 8, 16, 16], strides = [1, 1, 1, 1]} : vector<2x8x16x16xf32> to vector<1x8x16x16xf32>
    %10 = vector.shape_cast %9 : vector<1x8x16x16xf32> to vector<8x16x16xf32>
    %11 = arith.addf %8, %10 : vector<8x16x16xf32>
    %cst_4 = arith.constant 5.000000e-01 : f32
    %12 = vector.broadcast %cst_4 : f32 to vector<8x16x16xf32>
    %13 = arith.mulf %12, %11 : vector<8x16x16xf32>
    %c0_5 = arith.constant 0 : index
    %c0_6 = arith.constant 0 : index
    %c0_7 = arith.constant 0 : index
    %14 = vector.load %arg2[%c0_5, %c0_6, %c0_7] : memref<8x16x16xf32, #tpu.memory_space<vmem>>, vector<8x16x16xf32>
    %15 = arith.mulf %14, %13 : vector<8x16x16xf32>
    %16 = arith.subf %14, %15 : vector<8x16x16xf32>
    %c0_8 = arith.constant 0 : index
    %c0_9 = arith.constant 0 : index
    %c0_10 = arith.constant 0 : index
    %17 = vector.load %arg6[%c0_8, %c0_9, %c0_10] : memref<8x16x16xf32, #tpu.memory_space<vmem>>, vector<8x16x16xf32>
    tpu.vector_store %arg6[%c0_8, %c0_9, %c0_10], %15 {strides = array<i32>} : memref<8x16x16xf32, #tpu.memory_space<vmem>>, vector<8x16x16xf32>,
    %c0_11 = arith.constant 0 : index
    %c0_12 = arith.constant 0 : index
    %c0_13 = arith.constant 0 : index
    %18 = vector.load %arg3[%c0_11, %c0_12, %c0_13] : memref<8x16x32xf32, #tpu.memory_space<vmem>>, vector<8x16x32xf32>
    %19 = vector.shape_cast %18 : vector<8x16x32xf32> to vector<128x32xf32>
    %c0_14 = arith.constant 0 : index
    %c0_15 = arith.constant 0 : index
    %20 = vector.load %arg4[%c0_14, %c0_15] : memref<32x32xf32, #tpu.memory_space<vmem>>, vector<32x32xf32>
    %cst_16 = arith.constant dense<0.000000e+00> : vector<128x32xf32>
    %21 = tpu.matmul %19, %20, %cst_16 {dimension_numbers = #tpu.dot_dimension_numbers<[1], [0], [0], [1], [0, 0, 1, 1], [], []>} : vector<128x32xf32>, vector<32x32xf32>, vector<128x32xf32> -> vector<128x32xf32>
    %22 = vector.shape_cast %21 : vector<128x32xf32> to vector<8x16x32xf32>
    %23 = tpu.concatenate %15, %16 in 0 : vector<8x16x16xf32>, vector<8x16x16xf32> -> vector<16x16x16xf32>
    %24 = tpu.concatenate %22, %22 in 0 : vector<8x16x32xf32>, vector<8x16x32xf32> -> vector<16x16x32xf32>
    "tpu.trace_start"() <{level = 10 : i32, message = "bij,bjh->bih"}> : () -> ()
    %cst_17 = arith.constant dense<0.000000e+00> : vector<16x16x32xf32>
    %25 = tpu.matmul %23, %24, %cst_17 {dimension_numbers = #tpu.dot_dimension_numbers<[2], [1], [1], [2], [0, 0, 0, 1, 1, 2], [0], [0]>} : vector<16x16x16xf32>, vector<16x16x32xf32>, vector<16x16x32xf32> -> vector<16x16x32xf32>
    "tpu.trace_stop"() : () -> ()
    %cst_18 = arith.constant 0.000000e+00 : f32
    %26 = vector.broadcast %cst_18 : f32 to vector<16x16x32xf32>
    %27 = arith.maximumf %25, %26 : vector<16x16x32xf32>
    %28 = vector.shape_cast %27 : vector<16x16x32xf32> to vector<256x32xf32>
    %c0_19 = arith.constant 0 : index
    %c0_20 = arith.constant 0 : index
    %29 = vector.load %arg5[%c0_19, %c0_20] : memref<32x8xf32, #tpu.memory_space<vmem>>, vector<32x8xf32>
    %cst_21 = arith.constant dense<0.000000e+00> : vector<256x8xf32>
    %30 = tpu.matmul %28, %29, %cst_21 {dimension_numbers = #tpu.dot_dimension_numbers<[1], [0], [0], [1], [0, 0, 1, 1], [], []>} : vector<256x32xf32>, vector<32x8xf32>, vector<256x8xf32> -> vector<256x8xf32>
    %31 = vector.shape_cast %30 : vector<256x8xf32> to vector<16x16x8xf32>
    "tpu.trace_start"() <{level = 10 : i32, message = "bij,bjc->bic"}> : () -> ()
    %cst_22 = arith.constant dense<0.000000e+00> : vector<16x16x8xf32>
    %32 = tpu.matmul %23, %31, %cst_22 {dimension_numbers = #tpu.dot_dimension_numbers<[2], [1], [1], [2], [0, 0, 0, 1, 1, 2], [0], [0]>} : vector<16x16x16xf32>, vector<16x16x8xf32>, vector<16x16x8xf32> -> vector<16x16x8xf32>
    "tpu.trace_stop"() : () -> ()
    %33 = vector.shape_cast %32 : vector<16x16x8xf32> to vector<2x8x16x8xf32>
    %c0_23 = arith.constant 0 : index
    %c0_24 = arith.constant 0 : index
    %c0_25 = arith.constant 0 : index
    %c0_26 = arith.constant 0 : index
    %34 = vector.load %arg7[%c0_23, %c0_24, %c0_25, %c0_26] : memref<2x8x16x8xf32, #tpu.memory_space<vmem>>, vector<2x8x16x8xf32>
    tpu.vector_store %arg7[%c0_23, %c0_24, %c0_25, %c0_26], %33 {strides = array<i32>} : memref<2x8x16x8xf32, #tpu.memory_space<vmem>>, vector<2x8x16x8xf32>,
    return
  }
  func.func @transform_0(%arg0: i32) -> (i32, i32, i32, i32) {
    %c0_i32 = arith.constant 0 : i32
    %c0_i32_0 = arith.constant 0 : i32
    %c0_i32_1 = arith.constant 0 : i32
    %c0_i32_2 = arith.constant 0 : i32
    return %c0_i32, %arg0, %c0_i32_0, %c0_i32_1 : i32, i32, i32, i32
  }
  func.func @transform_1(%arg0: i32) -> (i32, i32, i32) {
    %c0_i32 = arith.constant 0 : i32
    %c0_i32_0 = arith.constant 0 : i32
    %c0_i32_1 = arith.constant 0 : i32
    return %arg0, %c0_i32, %c0_i32_0 : i32, i32, i32
  }
  func.func @transform_2(%arg0: i32) -> (i32, i32, i32) {
    %c0_i32 = arith.constant 0 : i32
    %c0_i32_0 = arith.constant 0 : i32
    %c0_i32_1 = arith.constant 0 : i32
    return %arg0, %c0_i32, %c0_i32_0 : i32, i32, i32
  }
  func.func @transform_3(%arg0: i32) -> (i32, i32) {
    %c0_i32 = arith.constant 0 : i32
    %c0_i32_0 = arith.constant 0 : i32
    %c0_i32_1 = arith.constant 0 : i32
    return %c0_i32, %c0_i32_0 : i32, i32
  }
  func.func @transform_4(%arg0: i32) -> (i32, i32) {
    %c0_i32 = arith.constant 0 : i32
    %c0_i32_0 = arith.constant 0 : i32
    %c0_i32_1 = arith.constant 0 : i32
    return %c0_i32, %c0_i32_0 : i32, i32
  }
  func.func @transform_5(%arg0: i32) -> (i32, i32, i32) {
    %c0_i32 = arith.constant 0 : i32
    %c0_i32_0 = arith.constant 0 : i32
    %c0_i32_1 = arith.constant 0 : i32
    return %arg0, %c0_i32, %c0_i32_0 : i32, i32, i32
  }
  func.func @transform_6(%arg0: i32) -> (i32, i32, i32, i32) {
    %c0_i32 = arith.constant 0 : i32
    %c0_i32_0 = arith.constant 0 : i32
    %c0_i32_1 = arith.constant 0 : i32
    %c0_i32_2 = arith.constant 0 : i32
    return %c0_i32, %arg0, %c0_i32_0, %c0_i32_1 : i32, i32, i32, i32
  }
}

</mosaic_0001>

<bundles_post_ra>
// kernel: tpu_custom_call.1
= control target key start
LH: loop header
LB: loop body
LE: loop exit
PB: predicated region body
PF: predicated region fallthrough
CT: control target
= control target key end

     0   :  { %s6111_s0 = inlined_call_operand.hbm [shape: f32[2,16,16,16], index: 0, kind: input, shape index: {}]   ;;  %s6112_s1 = inlined_call_operand.hbm [shape: f32[16,16,16], index: 1, kind: input, shape index: {}]   ;;  %s6113_s2 = inlined_call_operand.hbm [shape: f32[16,16,32], index: 2, kind: input, shape index: {}]   ;;  %s6114_s3 = inlined_call_operand.vmem [shape: f32[32,32], index: 3, kind: input, shape index: {}]   ;;  %s6115_s4 = inlined_call_operand.vmem [shape: f32[32,8], index: 4, kind: input, shape index: {}]   ;;  %s6116_s5 = inlined_call_operand.hbm [shape: f32[16,16,16], index: 5, kind: output, shape index: {0}]   ;;  %s6117_s6 = inlined_call_operand.vmem [shape: f32[2,16,16,8], index: 6, kind: output, shape index: {1}]  }
   0x1   :  { %6120 = sst [smem:[#allocation17_spill]] %s6111_s0 }
   0x2   :  { %12 = vsyncpa [#allocation3], 0 }
   0x3   :  { %14 = vsyncpa [#allocation3 + $0x1], 0 }
   0x4   :  { %15 = vsyncpa [#allocation6], 0 }
   0x5   :  { %17 = vsyncpa [#allocation6 + $0x1], 0 }
   0x6   :  { %18 = vsyncpa [#allocation4], 0 }
   0x7   :  { %20 = vsyncpa [#allocation4 + $0x1], 0  ;;  %s5263_s21 = smov 0   ;;  %s5265_s22 = smov 0  }
   0x8   :  { %s5267_s23 = smov 0   ;;  %s5269_s24 = smov 0  }
   0x9 LB: > { %s5284_s25 = sadd.s32 4294967295, %s5213_s24   ;;  %s4102_s26 = sadd.s32 4294967294, %s5213_s24   ;;  %s5213_s24 = sphi %s5269_s24, %s6134_s24   ;;  %s5209_s23 = sphi %s5267_s23, %s6133_s23   ;;  %s5205_s22 = sphi %s5265_s22, %s6132_s22   ;;  %s5201_s21 = sphi %s5263_s21, %s6131_s21  }
   0xa   : > { %s5288_s27 = sadd.s32 1, %s5213_s24   ;;  %s33_s28 = sadd.s32 1, %s5209_s23 }
   0xb   : > { %s30_s29 = ssub.s32 %s5213_s24, %s5288_s27  ;;  %p40_p0 = scmp.ne.s32.totalorder %s5209_s23, %s5205_s22 }
   0xc   : > { %p31_p1 = scmp.eq.s32.totalorder %s30_s29, 0  ;;  %p41_p2 = scmp.eq.s32.totalorder %s5213_s24, 0 }
   0xd   : > { %p46_p3 = scmp.ne.s32.totalorder %s5205_s22, %s5201_s21  ;;  %p47_p4 = scmp.eq.s32.totalorder %s5284_s25, 0 }
   0xe   : > { %s5300_s30 = scalar_select %p31_p1, %s5209_s23, %s33_s28  }
   0xf   : > { %p5302_p5 = por %p41_p2, %p40_p0  ;;  %p5306_p6 = por %p47_p4, %p46_p3 }
  0x10   : > { %6121 = sst [smem:[#allocation16_spill]] %s5300_s30  ;;  %p164_p7 = scmp.eq.s32.totalorder %s5284_s25, 1 }
  0x11   : > { %p170_p8 = scmp.eq.s32.totalorder %s4102_s26, 1  ;;  %p6118_p11 = scmp.ge.s32.totalorder %s5213_s24, 2 }
  0x12   : > { %p5311_p9 = por %p164_p7, %p40_p0 }
  0x13   : > { %p5315_p10 = por %p170_p8, %p46_p3  ;;  %218 = sbr.rel (%p6118_p11) target bundleno = 88 (0x58), region = 24 }
  0x14   : > { %s6124_s9 = scalar_select %p5311_p9, 1, 0 }
  0x15   : > { %s6125_s10 = scalar_select %p5315_p10, 1, 0 }
  0x1a   : > { %s5323_s11 = sand.u32 1, %s5209_s23   ;;  %s5326_s12 = sshll.u32 %s5213_s24, 11 }
  0x1b   : > { %s4105_s13 = sshll.u32 %s5323_s11, 8  ;;  %s6126_s0 = sld [smem:[#allocation17_spill]] }
  0x1c   : > { %s4897_s17 = scalar_select %p5302_p5, [#allocation0], [#allocation12] }
  0x1d   : > { %s226_s18 = scalar_lea.vmem [#allocation2], %s4105_s13  ;;  %s5215_s26 = smov 4096  }
  0x1e   : > { %s246_s19 = sshll.u32 %s226_s18, 4  ;;  %s238_s20 = sld [smem:[%s4897_s17]]   ;;  %s247_s19 = int_to_ptr.vmem [resolvable:$true] %s246_s19 }
  0x1f   : > { %4898 = sst [smem:[#allocation11]] (%p5302_p5), %s5215_s26  ;;  %s5216_s28 = smov 2048  }
  0x20   : > { %4899 = sst [smem:[#allocation11 + $0x1]] (%p5302_p5), %s5216_s28  ;;  %s5217_s29 = smov 16  }
  0x21   : > { %s233_s16 = scalar_lea.hbm %s6126_s0, %s5326_s12  ;;  %4900 = sst [smem:[#allocation11 + $0x2]] (%p5302_p5), %s5217_s29 }
  0x22   : > { %s5218_s14 = smov 128   ;;  %s5219_s15 = smov 8  }
  0x23   : > { %4901 = sst [smem:[#allocation11 + $0x3]] (%p5302_p5), %s5218_s14  ;;  %s223_s18 = scalar_lea.sflag [#allocation3], %s5323_s11 }
  0x24   : > { %4902 = sst [smem:[#allocation11 + $0x4]] (%p5302_p5), %s5218_s14  ;;  %s4109_s13 = sshll.u32 %s238_s20, 26 }
  0x25   : > { %4903 = sst [smem:[#allocation11 + $0x5]] (%p5302_p5), %s5219_s15  ;;  %s4110_s17 = sadd.s32 134217728, %s4109_s13 }
  0x26   : > { %s5220_s0 = smov [#allocation10]   ;;  %s269_s26 = sand.u32 1, %s5213_s24  }
  0x27   : > { %4904 = dma.general (%p5302_p5), %s233_s16, 4096, %s247_s19, %s223_s18, %s5220_s0, [#allocation11], %s4110_s17, 0  }
  0x28   : > { %s4111_s28 = sshll.u32 %s5323_s11, 7  ;;  %s5356_s14 = scalar_lea.hbm %s6112_s1, %s5326_s12 }
  0x29   : > { %s273_s20 = scalar_lea.vmem [#allocation5], %s4111_s28  ;;  %s5362_s0 = scalar_lea.sflag [#allocation6], %s269_s26 }
  0x2a   : > { %s281_s13 = sshll.u32 %s273_s20, 4  ;;  %s5087_s16 = scalar_lea.hbm %s5356_s14, 2048  ;;  %s5360_s13 = int_to_ptr.vmem [resolvable:$true] %s281_s13 }
  0x2b   : > { %p5088_p12 = scmp.ne.s32.totalorder %s5356_s14, %s5087_s16  ;;  %s5091_s15 = scalar_lea.hbm %s6112_s1, 4096 }
  0x2c   : > { %p5092_p1 = scmp.lt.u32.totalorder %s5356_s14, %s6112_s1  ;;  %p5093_p2 = scmp.lt.u32.totalorder %s5091_s15, %s5087_s16 }
  0x2d   : > { %p5089_p13 = pnand %p5088_p12, %p5302_p5  ;;  %p5095_p4 = scmp.lt.u32.totalorder %s5087_s16, %s5356_s14 }
  0x2e   : > { %p5094_p3 = por %p5093_p2, %p5092_p1 }
  0x2f   : > { %p5090_p0 = pneg %p5089_p13 }
  0x30   : > { %p5096_p7 = por %p5095_p4, %p5094_p3 }
  0x32   : > { %p5097_p8 = pnand %p5096_p7, %p5090_p0 }
  0x34   : > { %5100 = shalt.err (!%p5097_p8)
}
  0x35   : > { %s5101_s26 = scalar_lea.vmem %s5360_s13, 2048  ;;  %s5221_s29 = smov [#allocation5]  }
  0x36   : > { %p5102_p12 = scmp.ne.s32.totalorder %s5360_s13, %s5101_s26  ;;  %s5105_s20 = sshll.u32 %s5221_s29, 4  ;;  %s5106_s20 = int_to_ptr.vmem [resolvable:$false] %s5105_s20 }
  0x37   : > { %s5107_s19 = scalar_lea.vmem %s5106_s20, 4096  ;;  %p5108_p10 = scmp.lt.s32.totalorder %s5360_s13, %s5106_s20 }
  0x38   : > { %p5103_p13 = pnand %p5102_p12, %p5302_p5  ;;  %p5109_p9 = scmp.lt.s32.totalorder %s5107_s19, %s5101_s26 }
  0x3a   : > { %p5104_p11 = pneg %p5103_p13  ;;  %p5110_p1 = por %p5109_p9, %p5108_p10 }
  0x3c   : > { %p5111_p2 = pnand %p5110_p1, %p5104_p11 }
  0x3e   : > { %5114 = shalt.err (!%p5111_p2)
}
  0x3f   : > { %s5222_s16 = smov 128   ;;  %s5223_s30 = smov 8  }
  0x40   : > { %4905 = dma.hbm_to_vmem [thread:$0]  (%p5302_p5), %s5356_s14, 2048, %s5360_s13, %s5362_s0, %s5222_s16, %s5222_s16, %s5223_s30  }
  0x41   : > { %s295_s15 = scalar_lea.vmem [#allocation7], %s4111_s28  ;;  %s5395_s29 = scalar_lea.hbm %s6113_s2, %s5326_s12 }
  0x42   : > { %s303_s17 = sshll.u32 %s295_s15, 4  ;;  %s5115_s20 = scalar_lea.hbm %s5395_s29, 2048  ;;  %s5397_s17 = int_to_ptr.vmem [resolvable:$true] %s303_s17 }
  0x43   : > { %p5116_p9 = scmp.ne.s32.totalorder %s5395_s29, %s5115_s20  ;;  %s5119_s28 = scalar_lea.hbm %s6113_s2, 4096 }
  0x44   : > { %p5120_p0 = scmp.lt.u32.totalorder %s5395_s29, %s6113_s2  ;;  %p5121_p3 = scmp.lt.u32.totalorder %s5119_s28, %s5115_s20 }
  0x45   : > { %p5117_p10 = pnand %p5116_p9, %p5302_p5  ;;  %p5123_p7 = scmp.lt.u32.totalorder %s5115_s20, %s5395_s29 }
  0x46   : > { %p5122_p4 = por %p5121_p3, %p5120_p0 }
  0x47   : > { %p5118_p11 = pneg %p5117_p10 }
  0x48   : > { %p5124_p8 = por %p5123_p7, %p5122_p4 }
  0x4a   : > { %p5125_p12 = pnand %p5124_p8, %p5118_p11 }
  0x4c   : > { %5128 = shalt.err (!%p5125_p12)
}
  0x4d   : > { %s5129_s12 = scalar_lea.vmem %s5397_s17, 2048  ;;  %s5224_s15 = smov [#allocation7]  }
  0x4e   : > { %p5130_p13 = scmp.ne.s32.totalorder %s5397_s17, %s5129_s12  ;;  %s5133_s18 = sshll.u32 %s5224_s15, 4  ;;  %s5134_s18 = int_to_ptr.vmem [resolvable:$false] %s5133_s18 }
  0x4f   : > { %s5135_s26 = scalar_lea.vmem %s5134_s18, 4096  ;;  %p5136_p9 = scmp.lt.s32.totalorder %s5397_s17, %s5134_s18 }
  0x50   : > { %p5131_p1 = pnand %p5130_p13, %p5302_p5  ;;  %p5137_p10 = scmp.lt.s32.totalorder %s5135_s26, %s5129_s12 }
  0x52   : > { %p5132_p2 = pneg %p5131_p1  ;;  %p5138_p0 = por %p5137_p10, %p5136_p9 }
  0x54   : > { %p5139_p3 = pnand %p5138_p0, %p5132_p2 }
  0x56   : > { %5142 = shalt.err (!%p5139_p3)
}
  0x57   : > { %4906 = dma.hbm_to_vmem [thread:$0]  (%p5302_p5), %s5395_s29, 2048, %s5397_s17, %s5362_s0, %s5222_s16, %s5222_s16, %s5223_s30  }
  0x58 PF: > { %p4119_p11 = scmp.ge.s32.totalorder %s5213_s24, 1  ;;  %p311_p4 = scmp.lt.s32.totalorder %s5213_s24, 3 }
  0x5a   : > { %p312_p7 = pnand %p4119_p11, %p311_p4 }
  0x5b   : > { %s5427_s20 = sand.u32 (!%p312_p7), 1, %s5205_s22  }
  0x5c   : > { %315 = sbr.rel (%p312_p7) target bundleno = 1050 (0x41a), region = 40  ;;  %s4120_s7 = sshll.u32 (!%p312_p7), %s5427_s20, 8 }
  0x5d   : > { %s318_s14 = scalar_lea.sflag (!%p312_p7), [#allocation3], %s5427_s20  ;;  %s5433_s11 = scalar_lea.vmem (!%p312_p7), [#allocation2], %s4120_s7 }
  0x63   : > { %5188 = dma.done.wait (%p5306_p6), %s318_s14, 4096  }
  0x64   : > { %5190 = vsyncadd (%p5306_p6), %s318_s14, 4294963200  ;;  %s326_s0 = sand.u32 1, %s5284_s25   ;;  %s5441_s16 = sshll.u32 %s5427_s20, 7 }
  0x65   : > { %s327_s30 = scalar_lea.sflag [#allocation6], %s326_s0  ;;  %s5444_s17 = scalar_lea.vmem [#allocation5], %s5441_s16 }
  0x66   : > { %5192 = dma.done.wait (%p5306_p6), %s327_s30, 4096  }
  0x67   : > { %5194 = vsyncadd (%p5306_p6), %s327_s30, 4294963200  ;;  %vm696_vm0 = vcmask 261120   ;;  %v692_v0 = vld [vmem:[%s6114_s3] sm:$0xff]  ;;  %v693_v1 = vld [vmem:[%s6114_s3 + $0x8] sm:$0xff]  ;;  %s5463_s8 = scalar_lea.vmem [#allocation7], %s5441_s16  ;;  %vm659_vm1 = vcmask 130048  }
  0x68   : > { %v694_v2 = vld [vmem:[%s6114_s3 + $0x10] sm:$0xff]  ;;  %v4753_v3 = vpack.c.bf16 %v693_v1, %v692_v0  ;;  %v695_v4 = vld [vmem:[%s6114_s3 + $0x18] sm:$0xff]  ;;  %v676_v5 = vld [vmem:[%s5463_s8] sm:$0xff]  ;;  %s5532_s14 = scalar_lea.vmem [#allocation8], %s5441_s16  ;;  %s4254_s19 = sshll.u32 %s5284_s25, 11 }
  0x69   : > { %v4757_v6 = vpack.c.bf16 %v695_v4, %v694_v2  ;;  %4449 = vmatprep.mubr.msk.f32.mxu0 %vm696_vm0, %v676_v5  ;;  %v677_v7 = vld [vmem:[%s5463_s8 + $0x8] sm:$0xff]  ;;  %v678_v8 = vld [vmem:[%s5463_s8 + $0x10] sm:$0xff]  ;;  %v679_v9 = vld [vmem:[%s5463_s8 + $0x18] sm:$0xff]  ;;  %s3795_s12 = sshll.u32 %s5532_s14, 4  ;;  %s5925_s26 = scalar_lea.hbm %s6116_s5, %s4254_s19  ;;  %s5927_s12 = int_to_ptr.vmem [resolvable:$true] %s3795_s12 }
  0x6a   : > { %4754 = vmatprep.subr.bf16.mxu0 %v4753_v3  ;;  %v680_v10 = vld [vmem:[%s5463_s8 + $0x20] sm:$0xff]  ;;  %v681_v11 = vld [vmem:[%s5463_s8 + $0x28] sm:$0xff]  ;;  %v682_v12 = vld [vmem:[%s5463_s8 + $0x30] sm:$0xff]  ;;  %p6127_p6 = scmp.ne.s32.totalorder %s6124_s9, 0  ;;  %s5225_s0 = smov [#allocation8]  }
  0x6b   : > { %4756 = vmatpush3.bf16.msra.mxu0 %v4753_v3  ;;  %v683_v13 = vld [vmem:[%s5463_s8 + $0x38] sm:$0xff]  ;;  %v684_v14 = vld [vmem:[%s5463_s8 + $0x40] sm:$0xff]  ;;  %v685_v15 = vld [vmem:[%s5463_s8 + $0x48] sm:$0xff]  ;;  %s5147_s16 = sshll.u32 %s5225_s0, 4  ;;  %s5148_s16 = int_to_ptr.vmem [resolvable:$false] %s5147_s16 }
  0x6c   : > { %4758 = vmatprep.subr.bf16.mxu0 %v4757_v6  ;;  %v686_v16 = vld [vmem:[%s5463_s8 + $0x50] sm:$0xff]  ;;  %v687_v17 = vld [vmem:[%s5463_s8 + $0x58] sm:$0xff]  ;;  %v688_v18 = vld [vmem:[%s5463_s8 + $0x60] sm:$0xff]  ;;  %p5150_p13 = scmp.lt.s32.totalorder %s5927_s12, %s5148_s16 }
  0x6d   : > { %v689_v19 = vld [vmem:[%s5463_s8 + $0x68] sm:$0xff]  ;;  %v690_v20 = vld [vmem:[%s5463_s8 + $0x70] sm:$0xff]  ;;  %v691_v21 = vld [vmem:[%s5463_s8 + $0x78] sm:$0xff]  ;;  %s3777_s8 = scalar_lea.sflag [#allocation4], %s5427_s20 }
  0x6e   : > { %v387_v22 = vld [vmem:[%s5433_s11] sm:$0xff]  ;;  %v388_v26 = vld [vmem:[%s5433_s11 + $0x8] sm:$0xff]  ;;  %v389_v34 = vld [vmem:[%s5433_s11 + $0x10] sm:$0xff] }
  0x6f   : > { %4760 = vmatpush3.bf16.msra.mxu0 %v4757_v6  ;;  %v403_v23 = vld [vmem:[%s5433_s11 + $0x80] sm:$0xff]  ;;  %v419_v24 = vsub.f32 0.0, %v387_v22  ;;  %v404_v27 = vld [vmem:[%s5433_s11 + $0x88] sm:$0xff]  ;;  %v420_v28 = vsub.f32 0.0, %v388_v26  ;;  %v405_v35 = vld [vmem:[%s5433_s11 + $0x90] sm:$0xff]  ;;  %v421_v36 = vsub.f32 0.0, %v389_v34 }
  0x70   : > { %v435_v25 = vsub.f32 0.0, %v403_v23  ;;  %v436_v29 = vsub.f32 0.0, %v404_v27  ;;  %v437_v37 = vsub.f32 0.0, %v405_v35  ;;  %v390_v38 = vld [vmem:[%s5433_s11 + $0x18] sm:$0xff]  ;;  %v391_v46 = vld [vmem:[%s5433_s11 + $0x20] sm:$0xff]  ;;  %v392_v50 = vld [vmem:[%s5433_s11 + $0x28] sm:$0xff] }
  0x71   : > { %v451_v30 = vmul.f32 1.442695, %v419_v24  ;;  %v453_v32 = vmul.f32 1.442695, %v420_v28  ;;  %v406_v39 = vld [vmem:[%s5433_s11 + $0x98] sm:$0xff]  ;;  %v422_v40 = vsub.f32 0.0, %v390_v38 }
  0x72   : > { %4450 = vmatmul.mubr.msk.f32.vlgmr.msra.gmra.mrb[0].mxu0 %vm696_vm0, %v677_v7  ;;  %v483_v31 = vmul.f32 1.442695, %v435_v25  ;;  %v485_v33 = vmul.f32 1.442695, %v436_v29  ;;  %v438_v41 = vsub.f32 0.0, %v406_v39  ;;  %v407_v47 = vld [vmem:[%s5433_s11 + $0xa0] sm:$0xff] }
  0x73   : > { %4452 = vmatprep.mubr.msk.f32.mxu0 %vm696_vm0, %v678_v8  ;;  %4959 = vpow2.f32 %v451_v30  ;;  %v455_v42 = vmul.f32 1.442695, %v421_v36  ;;  %v487_v43 = vmul.f32 1.442695, %v437_v37  ;;  %v457_v44 = vmul.f32 1.442695, %v422_v40 }
  0x74   : > { %4961 = vpow2.f32 %v483_v31  ;;  %v489_v45 = vmul.f32 1.442695, %v438_v41  ;;  %v423_v48 = vsub.f32 0.0, %v391_v46  ;;  %v439_v49 = vsub.f32 0.0, %v407_v47  ;;  %v408_v51 = vld [vmem:[%s5433_s11 + $0xa8] sm:$0xff]  ;;  %v393_v58 = vld [vmem:[%s5433_s11 + $0x30] sm:$0xff] }
  0x75   : > { %4963 = vpow2.f32 %v453_v32  ;;  %v424_v52 = vsub.f32 0.0, %v392_v50  ;;  %v440_v53 = vsub.f32 0.0, %v408_v51  ;;  %v425_v59 = vsub.f32 0.0, %v393_v58  ;;  %v409_v3 = vld [vmem:[%s5433_s11 + $0xb0] sm:$0xff]  ;;  %v412_v22 = vld [vmem:[%s5433_s11 + $0xc8] sm:$0xff]  ;;  %v398_v46 = vld [vmem:[%s5433_s11 + $0x58] sm:$0xff] }
  0x76   : > { %4453 = vmatmul.mubr.msk.f32.gmra.mrb[2].mxu0 %vm696_vm0, %v679_v9  ;;  %4965 = vpow2.f32 %v485_v33  ;;  %v459_v54 = vmul.f32 1.442695, %v423_v48  ;;  %v491_v55 = vmul.f32 1.442695, %v439_v49  ;;  %v441_v9 = vsub.f32 0.0, %v409_v3  ;;  %v397_v38 = vld [vmem:[%s5433_s11 + $0x50] sm:$0xff] }
  0x77   : > { %4455 = vmatprep.mubr.msk.f32.mxu0 %vm696_vm0, %v680_v10  ;;  %4967 = vpow2.f32 %v455_v42  ;;  %v461_v56 = vmul.f32 1.442695, %v424_v52  ;;  %v493_v57 = vmul.f32 1.442695, %v440_v53  ;;  %v463_v4 = vmul.f32 1.442695, %v425_v59 }
  0x78   : > { %4969 = vpow2.f32 %v487_v43  ;;  %v394_v10 = vld [vmem:[%s5433_s11 + $0x38] sm:$0xff]  ;;  %v495_v25 = vmul.f32 1.442695, %v441_v9  ;;  %v444_v34 = vsub.f32 0.0, %v412_v22  ;;  %v413_v41 = vld [vmem:[%s5433_s11 + $0xd0] sm:$0xff]  ;;  %v429_v51 = vsub.f32 0.0, %v397_v38 }
  0x79   : > { %4971 = vpow2.f32 %v457_v44  ;;  %v414_v47 = vld [vmem:[%s5433_s11 + $0xd8] sm:$0xff]  ;;  %v5525_v58 = vld [vmem:[%s5444_s17 + $0x8] sm:$0xff] }
  0x7a   : > { %4456 = vmatmul.mubr.msk.f32.gmra.mrb[4].mxu0 %vm696_vm0, %v681_v11  ;;  %4973 = vpow2.f32 %v489_v45  ;;  %v501_v50 = vmul.f32 1.442695, %v444_v34 }
  0x7b   : > { %4458 = vmatprep.mubr.msk.f32.mxu0 %vm696_vm0, %v682_v12  ;;  %4975 = vpow2.f32 %v459_v54  ;;  %v5522_v54 = vld [vmem:[%s5444_s17] sm:$0xff] }
  0x7c   : > { %4977 = vpow2.f32 %v491_v55 }
  0x7d   : > { %v4960_v60 = vpop.eup %4959  ;;  %4979 = vpow2.f32 %v461_v56  ;;  %v445_v56 = vsub.f32 0.0, %v413_v41  ;;  %v415_v41 = vld [vmem:[%s5433_s11 + $0xe0] sm:$0xff] }
  0x7e   : > { %4459 = vmatmul.mubr.msk.f32.gmra.mrb[6].mxu0 %vm696_vm0, %v683_v13  ;;  %v4962_v61 = vpop.eup %4961  ;;  %v515_v62 = vadd.f32 1.0, %v4960_v60  ;;  %4981 = vpow2.f32 %v493_v57  ;;  %v410_v13 = vld [vmem:[%s5433_s11 + $0xb8] sm:$0xff]  ;;  %v430_v60 = vsub.f32 0.0, %v398_v46 }
  0x7f   : > { %4461 = vmatprep.mubr.msk.f32.mxu0 %vm696_vm0, %v684_v14  ;;  %v4964_v63 = vpop.eup %4963  ;;  %v531_v0 = vadd.f32 1.0, %v4962_v61  ;;  %v442_v26 = vsub.f32 0.0, %v410_v13  ;;  %v446_v61 = vsub.f32 0.0, %v414_v47 }
  0x80   : > { %v4966_v1 = vpop.eup %4965  ;;  %4983 = vrcp.f32 %v515_v62  ;;  %v516_v2 = vadd.f32 1.0, %v4964_v63  ;;  %v399_v62 = vld [vmem:[%s5433_s11 + $0x60] sm:$0xff]  ;;  %v473_v13 = vmul.f32 1.442695, %v430_v60 }
  0x81   : > { %4985 = vrcp.f32 %v531_v0  ;;  %v532_v5 = vadd.f32 1.0, %v4966_v1  ;;  %v4968_v6 = vpop.eup %4967  ;;  %v497_v40 = vmul.f32 1.442695, %v442_v26  ;;  %v5558_v26 = vld [vmem:[%s5444_s17 + $0x20] sm:$0xff] }
  0x82   : > { %4462 = vmatmul.mubr.msk.f32.gmra.mrb[8].mxu0 %vm696_vm0, %v685_v15  ;;  %4987 = vrcp.f32 %v516_v2  ;;  %v4970_v7 = vpop.eup %4969  ;;  %v517_v8 = vadd.f32 1.0, %v4968_v6 }
  0x83   : > { %4464 = vmatprep.mubr.msk.f32.mxu0 %vm696_vm0, %v686_v16  ;;  %4989 = vrcp.f32 %v532_v5  ;;  %v4972_v11 = vpop.eup %4971  ;;  %v533_v12 = vadd.f32 1.0, %v4970_v7  ;;  %v395_v16 = vld [vmem:[%s5433_s11 + $0x40] sm:$0xff]  ;;  %v503_v7 = vmul.f32 1.442695, %v445_v56 }
  0x84   : > { %4991 = vpow2.f32 %v463_v4  ;;  %v4974_v14 = vpop.eup %4973  ;;  %v518_v15 = vadd.f32 1.0, %v4972_v11  ;;  %v427_v29 = vsub.f32 0.0, %v395_v16  ;;  %v471_v4 = vmul.f32 1.442695, %v429_v51  ;;  %v613_v11 = vld [vmem:[%s5444_s17 + $0x10] sm:$0xff] }
  0x85   : > { %4993 = vrcp.f32 %v517_v8  ;;  %v431_v8 = vsub.f32 0.0, %v399_v62  ;;  %v505_v16 = vmul.f32 1.442695, %v446_v61  ;;  %v402_v62 = vld [vmem:[%s5433_s11 + $0x78] sm:$0xff] }
  0x86   : > { %4465 = vmatmul.mubr.msk.f32.gmra.mrb[10].mxu0 %vm696_vm0, %v687_v17  ;;  %v411_v17 = vld [vmem:[%s5433_s11 + $0xc0] sm:$0xff]  ;;  %4995 = vrcp.f32 %v533_v12  ;;  %v467_v44 = vmul.f32 1.442695, %v427_v29  ;;  %v5561_v29 = vld [vmem:[%s5444_s17 + $0x28] sm:$0xff] }
  0x87   : > { %4467 = vmatprep.mubr.msk.f32.mxu0 %vm696_vm0, %v688_v18  ;;  %v4976_v18 = vpop.eup %4975  ;;  %4997 = vrcp.f32 %v518_v15  ;;  %v443_v30 = vsub.f32 0.0, %v411_v17  ;;  %v5547_v15 = vld [vmem:[%s5444_s17 + $0x18] sm:$0xff]  ;;  %v475_v22 = vmul.f32 1.442695, %v431_v8 }
  0x88   : > { %v4978_v23 = vpop.eup %4977  ;;  %v519_v24 = vadd.f32 1.0, %v4976_v18 }
  0x89   : > { %v4980_v27 = vpop.eup %4979  ;;  %v535_v28 = vadd.f32 1.0, %v4978_v23  ;;  %v499_v45 = vmul.f32 1.442695, %v443_v30 }
  0x8a   : > { %4468 = vmatmul.mubr.msk.f32.gmra.mrb[12].mxu0 %vm696_vm0, %v689_v19  ;;  %v534_v19 = vadd.f32 1.0, %v4974_v14  ;;  %v4982_v31 = vpop.eup %4981  ;;  %v520_v32 = vadd.f32 1.0, %v4980_v27 }
  0x8b   : > { %4470 = vmatprep.mubr.msk.f32.mxu0 %vm696_vm0, %v690_v20  ;;  %v426_v20 = vsub.f32 0.0, %v394_v10  ;;  %v4984_v35 = vpop.eup %4983  ;;  %v536_v36 = vadd.f32 1.0, %v4982_v31 }
  0x8c   : > { %4999 = vrcp.f32 %v534_v19  ;;  %v4986_v39 = vpop.eup %4985 }
  0x8d   : > { %5001 = vrcp.f32 %v519_v24  ;;  %v465_v37 = vmul.f32 1.442695, %v426_v20  ;;  %v4988_v42 = vpop.eup %4987  ;;  %v579_v43 = vadd.f32 %v4986_v39, %v4984_v35 }
  0x8e   : > { %4471 = vmatmul.mubr.msk.f32.gmra.mrb[14].mxu0 %vm696_vm0, %v691_v21  ;;  %v396_v21 = vld [vmem:[%s5433_s11 + $0x48] sm:$0xff]  ;;  %5003 = vrcp.f32 %v535_v28  ;;  %v4990_v48 = vpop.eup %4989 }
  0x8f   : > { %v428_v33 = vsub.f32 0.0, %v396_v21  ;;  %5005 = vrcp.f32 %v520_v32  ;;  %v4992_v52 = vpop.eup %4991  ;;  %v595_v53 = vmul.f32 0.5, %v579_v43  ;;  %v580_v55 = vadd.f32 %v4990_v48, %v4988_v42  ;;  %v400_v43 = vld [vmem:[%s5433_s11 + $0x68] sm:$0xff] }
  0x90   : > { %5007 = vrcp.f32 %v536_v36  ;;  %v4994_v57 = vpop.eup %4993  ;;  %v521_v59 = vadd.f32 1.0, %v4992_v52  ;;  %v447_v48 = vsub.f32 0.0, %v415_v41  ;;  %v432_v52 = vsub.f32 0.0, %v400_v43 }
  0x91   : > { %5009 = vpow2.f32 %v495_v25  ;;  %v469_v49 = vmul.f32 1.442695, %v428_v33  ;;  %v4996_v63 = vpop.eup %4995  ;;  %v5529_v0 = vmul.f32 %v5522_v54, %v595_v53  ;;  %v596_v1 = vmul.f32 0.5, %v580_v55  ;;  %v401_v53 = vld [vmem:[%s5433_s11 + $0x70] sm:$0xff] }
  0x92   : > { %5011 = vpow2.f32 %v465_v37  ;;  %v4998_v2 = vpop.eup %4997  ;;  %v581_v3 = vadd.f32 %v4996_v63, %v4994_v57  ;;  %v417_v57 = vld [vmem:[%s5433_s11 + $0xf0] sm:$0xff] }
  0x93   : > { %5013 = vpow2.f32 %v497_v40  ;;  %660 = vst.msk [vmem:[%s5532_s14] sm:$0xff] %vm659_vm1, %v5529_v0  ;;  %4477 = vmatprep.mubr.msk.f32.mxu1 %vm659_vm1, %v5529_v0  ;;  %v5540_v6 = vmul.f32 %v5525_v58, %v596_v1  ;;  %v449_v8 = vsub.f32 0.0, %v417_v57 }
  0x94   : > { %5015 = vpow2.f32 %v467_v44  ;;  %v597_v10 = vmul.f32 0.5, %v581_v3  ;;  %v433_v3 = vsub.f32 0.0, %v401_v53  ;;  %v5618_v53 = vld [vmem:[%s5444_s17 + $0x50] sm:$0xff] }
  0x95   : > { %5017 = vrcp.f32 %v521_v59  ;;  %661 = vst.msk [vmem:[%s5532_s14 + $0x8] sm:$0xff] %vm659_vm1, %v5540_v6 }
  0x96   : > { %v5000_v5 = vpop.eup %4999  ;;  %5019 = vpow2.f32 %v499_v45  ;;  %v5549_v18 = vmul.f32 %v613_v11, %v597_v10  ;;  %v434_v10 = vsub.f32 0.0, %v402_v62 }
  0x97   : > { %v5002_v9 = vpop.eup %5001  ;;  %v582_v12 = vadd.f32 %v5000_v5, %v4998_v2  ;;  %5021 = vpow2.f32 %v469_v49  ;;  %v416_v49 = vld [vmem:[%s5433_s11 + $0xe8] sm:$0xff]  ;;  %v507_v2 = vmul.f32 1.442695, %v447_v48 }
  0x98   : > { %v5004_v14 = vpop.eup %5003  ;;  %5023 = vpow2.f32 %v501_v50  ;;  %662 = vst.msk [vmem:[%s5532_s14 + $0x10] sm:$0xff] %vm659_vm1, %v5549_v18  ;;  %v5570_v34 = vsub.f32 %v613_v11, %v5549_v18  ;;  %v448_v61 = vsub.f32 0.0, %v416_v49 }
  0x99   : > { %v5006_v17 = vpop.eup %5005  ;;  %v598_v19 = vmul.f32 0.5, %v582_v12  ;;  %v583_v20 = vadd.f32 %v5004_v14, %v5002_v9  ;;  %5025 = vpow2.f32 %v471_v4  ;;  %v418_v4 = vld [vmem:[%s5433_s11 + $0xf8] sm:$0xff]  ;;  %s5143_s11 = scalar_lea.vmem %s5927_s12, 2048 }
  0x9a   : > { %v5008_v21 = vpop.eup %5007  ;;  %5027 = vpow2.f32 %v503_v7  ;;  %4540 = vmatprep.mubr.msk.f32.mxu0 %vm659_vm1, %v5570_v34  ;;  %v477_v7 = vmul.f32 1.442695, %v432_v52  ;;  %v450_v14 = vsub.f32 0.0, %v418_v4  ;;  %p5144_p5 = scmp.ne.s32.totalorder %s5927_s12, %s5143_s11 }
  0x9b   : > { %v5010_v23 = vpop.eup %5009  ;;  %v5555_v24 = vmul.f32 %v5547_v15, %v598_v19  ;;  %v599_v25 = vmul.f32 0.5, %v583_v20  ;;  %v584_v27 = vadd.f32 %v5008_v21, %v5006_v17  ;;  %5029 = vpow2.f32 %v473_v13  ;;  %v5591_v17 = vld [vmem:[%s5444_s17 + $0x30] sm:$0xff] }
  0x9c   : > { %v5012_v28 = vpop.eup %5011  ;;  %v537_v30 = vadd.f32 1.0, %v5010_v23  ;;  %5031 = vpow2.f32 %v505_v16  ;;  %v509_v13 = vmul.f32 1.442695, %v448_v61  ;;  %v479_v19 = vmul.f32 1.442695, %v433_v3  ;;  %v5627_v61 = vld [vmem:[%s5444_s17 + $0x58] sm:$0xff]  ;;  %p5145_p8 = pnand %p5144_p5, %p6127_p6 }
  0x9d   : > { %v5014_v31 = vpop.eup %5013  ;;  %663 = vst.msk [vmem:[%s5532_s14 + $0x18] sm:$0xff] %vm659_vm1, %v5555_v24  ;;  %v5567_v32 = vmul.f32 %v5558_v26, %v599_v25  ;;  %v600_v33 = vmul.f32 0.5, %v584_v27  ;;  %v522_v36 = vadd.f32 1.0, %v5012_v28  ;;  %v481_v27 = vmul.f32 1.442695, %v434_v10 }
  0x9e   : > { %v5016_v35 = vpop.eup %5015  ;;  %5033 = vrcp.f32 %v537_v30  ;;  %v538_v37 = vadd.f32 1.0, %v5014_v31  ;;  %v5597_v31 = vld [vmem:[%s5444_s17 + $0x38] sm:$0xff]  ;;  %p5146_p12 = pneg %p5145_p8 }
  0x9f   : > { %v5018_v38 = vpop.eup %5017  ;;  %664 = vst.msk [vmem:[%s5532_s14 + $0x20] sm:$0xff] %vm659_vm1, %v5567_v32  ;;  %v5576_v39 = vmul.f32 %v5561_v29, %v600_v33  ;;  %v523_v40 = vadd.f32 1.0, %v5016_v35  ;;  %5035 = vpow2.f32 %v475_v22  ;;  %v511_v22 = vmul.f32 1.442695, %v449_v8 }
  0xa0   : > { %v5020_v42 = vpop.eup %5019  ;;  %5037 = vrcp.f32 %v522_v36  ;;  %v513_v33 = vmul.f32 1.442695, %v450_v14 }
  0xa1   : > { %v5022_v44 = vpop.eup %5021  ;;  %665 = vst.msk [vmem:[%s5532_s14 + $0x28] sm:$0xff] %vm659_vm1, %v5576_v39  ;;  %5039 = vrcp.f32 %v538_v37  ;;  %v539_v45 = vadd.f32 1.0, %v5020_v42 }
  0xa2   : > { %v5024_v46 = vpop.eup %5023  ;;  %5041 = vrcp.f32 %v523_v40  ;;  %v524_v47 = vadd.f32 1.0, %v5022_v44  ;;  %v5603_v40 = vld [vmem:[%s5444_s17 + $0x40] sm:$0xff] }
  0xa3   : > { %v5026_v50 = vpop.eup %5025  ;;  %5043 = vrcp.f32 %v539_v45  ;;  %v540_v51 = vadd.f32 1.0, %v5024_v46  ;;  %v5609_v46 = vld [vmem:[%s5444_s17 + $0x48] sm:$0xff] }
  0xa4   : > { %v5028_v55 = vpop.eup %5027  ;;  %5045 = vrcp.f32 %v524_v47  ;;  %v525_v56 = vadd.f32 1.0, %v5026_v50 }
  0xa5   : > { %v5030_v59 = vpop.eup %5029  ;;  %5047 = vrcp.f32 %v540_v51  ;;  %v541_v60 = vadd.f32 1.0, %v5028_v55 }
  0xa6   : > { %v5032_v63 = vpop.eup %5031  ;;  %5049 = vrcp.f32 %v525_v56  ;;  %v526_v1 = vadd.f32 1.0, %v5030_v59 }
  0xa7   : > { %5051 = vrcp.f32 %v541_v60  ;;  %v542_v5 = vadd.f32 1.0, %v5032_v63 }
  0xa8   : > { %v5034_v9 = vpop.eup %5033  ;;  %5053 = vrcp.f32 %v526_v1 }
  0xa9   : > { %v5036_v11 = vpop.eup %5035  ;;  %v585_v12 = vadd.f32 %v5034_v9, %v5018_v38  ;;  %5055 = vrcp.f32 %v542_v5 }
  0xaa   : > { %v5038_v16 = vpop.eup %5037  ;;  %5057 = vpow2.f32 %v507_v2  ;;  %v527_v47 = vadd.f32 1.0, %v5036_v11 }
  0xab   : > { %v5040_v20 = vpop.eup %5039  ;;  %v601_v21 = vmul.f32 0.5, %v585_v12  ;;  %5059 = vpow2.f32 %v477_v7 }
  0xac   : > { %v5042_v23 = vpop.eup %5041  ;;  %v586_v25 = vadd.f32 %v5040_v20, %v5038_v16  ;;  %5061 = vpow2.f32 %v509_v13 }
  0xad   : > { %v5044_v28 = vpop.eup %5043  ;;  %v5594_v30 = vmul.f32 %v5591_v17, %v601_v21  ;;  %5063 = vpow2.f32 %v479_v19 }
  0xae   : > { %v5046_v35 = vpop.eup %5045  ;;  %v602_v36 = vmul.f32 0.5, %v586_v25  ;;  %v587_v37 = vadd.f32 %v5044_v28, %v5042_v23  ;;  %5065 = vpow2.f32 %v511_v22  ;;  %v5645_v22 = vld [vmem:[%s5444_s17 + $0x60] sm:$0xff] }
  0xaf   : > { %v5048_v38 = vpop.eup %5047  ;;  %666 = vst.msk [vmem:[%s5532_s14 + $0x30] sm:$0xff] %vm659_vm1, %v5594_v30  ;;  %5067 = vpow2.f32 %v481_v27 }
  0xb0   : > { %v5050_v41 = vpop.eup %5049  ;;  %v5606_v42 = vmul.f32 %v5597_v31, %v602_v36  ;;  %v603_v43 = vmul.f32 0.5, %v587_v37  ;;  %v588_v44 = vadd.f32 %v5048_v38, %v5046_v35  ;;  %5069 = vpow2.f32 %v513_v33  ;;  %v5651_v36 = vld [vmem:[%s5444_s17 + $0x68] sm:$0xff] }
  0xb1   : > { %v5052_v45 = vpop.eup %5051  ;;  %5071 = vrcp.f32 %v527_v47 }
  0xb2   : > { %v5054_v48 = vpop.eup %5053  ;;  %667 = vst.msk [vmem:[%s5532_s14 + $0x38] sm:$0xff] %vm659_vm1, %v5606_v42  ;;  %v5615_v49 = vmul.f32 %v5603_v40, %v603_v43  ;;  %v604_v50 = vmul.f32 0.5, %v588_v44  ;;  %v589_v51 = vadd.f32 %v5052_v45, %v5050_v41  ;;  %v5657_v44 = vld [vmem:[%s5444_s17 + $0x70] sm:$0xff] }
  0xb3   : > { %v5056_v52 = vpop.eup %5055 }
  0xb4   : > { %v5058_v55 = vpop.eup %5057  ;;  %668 = vst.msk [vmem:[%s5532_s14 + $0x40] sm:$0xff] %vm659_vm1, %v5615_v49  ;;  %v5624_v56 = vmul.f32 %v5609_v46, %v604_v50  ;;  %v605_v57 = vmul.f32 0.5, %v589_v51  ;;  %v590_v59 = vadd.f32 %v5056_v52, %v5054_v48  ;;  %v5663_v50 = vld [vmem:[%s5444_s17 + $0x78] sm:$0xff] }
  0xb5   : > { %v5060_v60 = vpop.eup %5059  ;;  %v543_v62 = vadd.f32 1.0, %v5058_v55 }
  0xb6   : > { %669 = vst.msk [vmem:[%s5532_s14 + $0x48] sm:$0xff] %vm659_vm1, %v5624_v56  ;;  %v5633_v63 = vmul.f32 %v5618_v53, %v605_v57  ;;  %v606_v1 = vmul.f32 0.5, %v590_v59  ;;  %v528_v2 = vadd.f32 1.0, %v5060_v60  ;;  %v5062_v3 = vpop.eup %5061 }
  0xb7   : > { %5073 = vrcp.f32 %v543_v62  ;;  %v5064_v4 = vpop.eup %5063  ;;  %v544_v7 = vadd.f32 1.0, %v5062_v3 }
  0xb8   : > { %670 = vst.msk [vmem:[%s5532_s14 + $0x50] sm:$0xff] %vm659_vm1, %v5633_v63  ;;  %v5639_v5 = vmul.f32 %v5627_v61, %v606_v1  ;;  %5075 = vrcp.f32 %v528_v2  ;;  %v5066_v8 = vpop.eup %5065  ;;  %v529_v9 = vadd.f32 1.0, %v5064_v4 }
  0xb9   : > { %v5068_v10 = vpop.eup %5067  ;;  %5077 = vrcp.f32 %v544_v7  ;;  %v545_v11 = vadd.f32 1.0, %v5066_v8  ;;  %v5692_v8 = vsub.f32 %v5547_v15, %v5555_v24 }
  0xba   : > { %671 = vst.msk [vmem:[%s5532_s14 + $0x58] sm:$0xff] %vm659_vm1, %v5639_v5  ;;  %v5070_v12 = vpop.eup %5069  ;;  %5079 = vrcp.f32 %v529_v9  ;;  %v530_v13 = vadd.f32 1.0, %v5068_v10  ;;  %v5696_v9 = vsub.f32 %v5591_v17, %v5594_v30 }
  0xbb   : > { %5081 = vrcp.f32 %v545_v11  ;;  %v546_v14 = vadd.f32 1.0, %v5070_v12  ;;  %v5072_v16 = vpop.eup %5071 }
  0xbc   : > { %5083 = vrcp.f32 %v530_v13 }
  0xbd   : > { %5085 = vrcp.f32 %v546_v14  ;;  %v5714_v14 = vsub.f32 %v5597_v31, %v5606_v42 }
  0xc1   : > { %v5074_v19 = vpop.eup %5073 }
  0xc2   : > { %v5076_v20 = vpop.eup %5075  ;;  %v591_v21 = vadd.f32 %v5074_v19, %v5072_v16  ;;  %v5718_v16 = vsub.f32 %v5618_v53, %v5633_v63 }
  0xc3   : > { %v5078_v23 = vpop.eup %5077 }
  0xc4   : > { %v607_v25 = vmul.f32 0.5, %v591_v21  ;;  %v5080_v27 = vpop.eup %5079  ;;  %v592_v28 = vadd.f32 %v5078_v23, %v5076_v20 }
  0xc5   : > { %v5082_v33 = vpop.eup %5081 }
  0xc6   : > { %v5648_v35 = vmul.f32 %v5645_v22, %v607_v25  ;;  %v5084_v37 = vpop.eup %5083  ;;  %v608_v38 = vmul.f32 0.5, %v592_v28  ;;  %v593_v41 = vadd.f32 %v5082_v33, %v5080_v27  ;;  %v5734_v25 = vsub.f32 %v5627_v61, %v5639_v5 }
  0xc7   : > { %v5086_v43 = vpop.eup %5085  ;;  %v5752_v61 = vsub.f32 %v5522_v54, %v5529_v0  ;;  %v5772_v54 = vsub.f32 %v5558_v26, %v5567_v32  ;;  %v5790_v26 = vsub.f32 %v5603_v40, %v5615_v49 }
  0xc8   : > { %672 = vst.msk [vmem:[%s5532_s14 + $0x60] sm:$0xff] %vm659_vm1, %v5648_v35  ;;  %v5660_v45 = vmul.f32 %v5651_v36, %v608_v38  ;;  %v609_v47 = vmul.f32 0.5, %v593_v41  ;;  %v594_v48 = vadd.f32 %v5086_v43, %v5084_v37  ;;  %v5763_v41 = vsub.f32 %v5525_v58, %v5540_v6  ;;  %v2219_v43 = vld [vmem:[%s6115_s4 + $0x8] sm:$0xff] }
  0xc9   : > { %v5783_v58 = vsub.f32 %v5561_v29, %v5576_v39  ;;  %v5802_v29 = vsub.f32 %v5609_v46, %v5624_v56  ;;  %v5808_v40 = vsub.f32 %v5645_v22, %v5648_v35  ;;  %v2220_v46 = vld [vmem:[%s6115_s4 + $0x10] sm:$0xff]  ;;  %v2221_v22 = vld [vmem:[%s6115_s4 + $0x18] sm:$0xff] }
  0xca   : > { %673 = vst.msk [vmem:[%s5532_s14 + $0x68] sm:$0xff] %vm659_vm1, %v5660_v45  ;;  %v5669_v51 = vmul.f32 %v5657_v44, %v609_v47  ;;  %v610_v52 = vmul.f32 0.5, %v594_v48  ;;  %v5814_v47 = vsub.f32 %v5651_v36, %v5660_v45  ;;  %v4829_v48 = vpack.c.bf16 %v2221_v22, %v2220_v46 }
  0xcc   : > { %674 = vst.msk [vmem:[%s5532_s14 + $0x70] sm:$0xff] %vm659_vm1, %v5669_v51  ;;  %v5675_v55 = vmul.f32 %v5663_v50, %v610_v52  ;;  %v5738_v27 = vsub.f32 %v5657_v44, %v5669_v51 }
  0xce   : > { %675 = vst.msk [vmem:[%s5532_s14 + $0x78] sm:$0xff] %vm659_vm1, %v5675_v55  ;;  %v5757_v38 = vsub.f32 %v5663_v50, %v5675_v55  ;;  %s5149_s14 = scalar_lea.vmem %s5148_s16, 4096 }
  0xcf   : > { %p5151_p1 = scmp.lt.s32.totalorder %s5149_s14, %s5143_s11 }
  0xd1   : > { %p5152_p2 = por %p5151_p1, %p5150_p13 }
  0xd3   : > { %p5153_p9 = pnand %p5152_p2, %p5146_p12 }
 0x145   : > { %v4451_v57 = vpop.f32.mrb[0].mxu0 }
 0x146   : > { %v811_v59 = vpop.f32.mrb[1].mxu0 }
 0x147   : > { %v5680_v60 = vpack.c.bf16 %v4451_v57, %v811_v59 }
 0x149   : > { %v4454_v62 = vpop.f32.mrb[2].mxu0  ;;  %4762 = vmatprep.subr.bf16.mxu1 %v5680_v60 }
 0x14a   : > { %v821_v1 = vpop.f32.mrb[3].mxu0  ;;  %4764 = vmatpush3.bf16.msra.mxu1 %v5680_v60 }
 0x14b   : > { %v4765_v2 = vpack.c.bf16 %v4454_v62, %v821_v1 }
 0x14d   : > { %v4457_v3 = vpop.f32.mrb[4].mxu0  ;;  %4478 = vmatmul.mubr.msk.f32.vlgmr.msra.gmra.mrb[0].mxu1 %vm659_vm1, %v5540_v6  ;;  %4766 = vmatprep.subr.bf16.mxu1 %v4765_v2 }
 0x14e   : > { %4798 = vmatprep.subr.bf16.mxu0 %v4765_v2  ;;  %v831_v4 = vpop.f32.mrb[5].mxu0  ;;  %4768 = vmatpush3.bf16.msra.mxu1 %v4765_v2 }
 0x14f   : > { %v5686_v7 = vpack.c.bf16 %v4457_v3, %v831_v4  ;;  %4800 = vmatpush3.bf16.msra.mxu0 %v4765_v2  ;;  %4484 = vmatprep.mubr.msk.f32.mxu1 %vm659_vm1, %v5549_v18 }
 0x151   : > { %v4460_v10 = vpop.f32.mrb[6].mxu0  ;;  %4485 = vmatmul.mubr.msk.f32.vlgmr.msra.gmra.mrb[2].mxu1 %vm659_vm1, %v5555_v24  ;;  %4770 = vmatprep.subr.bf16.mxu1 %v5686_v7 }
 0x152   : > { %v841_v11 = vpop.f32.mrb[7].mxu0  ;;  %4772 = vmatpush3.bf16.msra.mxu1 %v5686_v7  ;;  %4491 = vmatprep.mubr.msk.f32.mxu1 %vm659_vm1, %v5567_v32 }
 0x153   : > { %v4773_v12 = vpack.c.bf16 %v4460_v10, %v841_v11  ;;  %4541 = vmatmul.mubr.msk.f32.vlgmr.msra.gmra.mrb[16].mxu0 %vm659_vm1, %v5692_v8 }
 0x154   : > { %4554 = vmatprep.mubr.msk.f32.mxu0 %vm659_vm1, %v5696_v9 }
 0x155   : > { %v4463_v15 = vpop.f32.mrb[8].mxu0  ;;  %4492 = vmatmul.mubr.msk.f32.vlgmr.msra.gmra.mrb[4].mxu1 %vm659_vm1, %v5576_v39  ;;  %4774 = vmatprep.subr.bf16.mxu1 %v4773_v12 }
 0x156   : > { %4806 = vmatprep.subr.bf16.mxu0 %v4773_v12  ;;  %v851_v17 = vpop.f32.mrb[9].mxu0  ;;  %4776 = vmatpush3.bf16.msra.mxu1 %v4773_v12 }
 0x157   : > { %v4777_v13 = vpack.c.bf16 %v4463_v15, %v851_v17  ;;  %4808 = vmatpush3.bf16.msra.mxu0 %v4773_v12  ;;  %4498 = vmatprep.mubr.msk.f32.mxu1 %vm659_vm1, %v5594_v30 }
 0x159   : > { %v4466_v19 = vpop.f32.mrb[10].mxu0  ;;  %4499 = vmatmul.mubr.msk.f32.vlgmr.msra.gmra.mrb[6].mxu1 %vm659_vm1, %v5606_v42  ;;  %4778 = vmatprep.subr.bf16.mxu1 %v4777_v13 }
 0x15a   : > { %v861_v20 = vpop.f32.mrb[11].mxu0  ;;  %4780 = vmatpush3.bf16.msra.mxu1 %v4777_v13  ;;  %4505 = vmatprep.mubr.msk.f32.mxu1 %vm659_vm1, %v5615_v49 }
 0x15b   : > { %v4781_v21 = vpack.c.bf16 %v4466_v19, %v861_v20  ;;  %4555 = vmatmul.mubr.msk.f32.vlgmr.msra.gmra.mrb[18].mxu0 %vm659_vm1, %v5714_v14 }
 0x15c   : > { %4568 = vmatprep.mubr.msk.f32.mxu0 %vm659_vm1, %v5718_v16 }
 0x15d   : > { %v4469_v31 = vpop.f32.mrb[12].mxu0  ;;  %4506 = vmatmul.mubr.msk.f32.vlgmr.msra.gmra.mrb[8].mxu1 %vm659_vm1, %v5624_v56  ;;  %4782 = vmatprep.subr.bf16.mxu1 %v4781_v21 }
 0x15e   : > { %4814 = vmatprep.subr.bf16.mxu0 %v4781_v21  ;;  %v871_v53 = vpop.f32.mrb[13].mxu0  ;;  %4784 = vmatpush3.bf16.msra.mxu1 %v4781_v21 }
 0x15f   : > { %v4785_v23 = vpack.c.bf16 %v4469_v31, %v871_v53  ;;  %4816 = vmatpush3.bf16.msra.mxu0 %v4781_v21  ;;  %4512 = vmatprep.mubr.msk.f32.mxu1 %vm659_vm1, %v5633_v63 }
 0x161   : > { %v4472_v28 = vpop.f32.mrb[14].mxu0  ;;  %4513 = vmatmul.mubr.msk.f32.vlgmr.msra.gmra.mrb[10].mxu1 %vm659_vm1, %v5639_v5  ;;  %4786 = vmatprep.subr.bf16.mxu1 %v4785_v23 }
 0x162   : > { %v881_v33 = vpop.f32.mrb[15].mxu0  ;;  %4788 = vmatpush3.bf16.msra.mxu1 %v4785_v23  ;;  %4519 = vmatprep.mubr.msk.f32.mxu1 %vm659_vm1, %v5648_v35 }
 0x163   : > { %v4789_v37 = vpack.c.bf16 %v4472_v28, %v881_v33  ;;  %4569 = vmatmul.mubr.msk.f32.vlgmr.msra.gmra.mrb[20].mxu0 %vm659_vm1, %v5734_v25 }
 0x164   : > { %4582 = vmatprep.mubr.msk.f32.mxu0 %vm659_vm1, %v5738_v27 }
 0x165   : > { %4520 = vmatmul.mubr.msk.f32.vlgmr.msra.gmra.mrb[12].mxu1 %vm659_vm1, %v5660_v45  ;;  %4790 = vmatprep.subr.bf16.mxu1 %v4789_v37 }
 0x166   : > { %4822 = vmatprep.subr.bf16.mxu0 %v4789_v37  ;;  %4792 = vmatpush3.bf16.msra.mxu1 %v4789_v37 }
 0x167   : > { %4824 = vmatpush3.bf16.msra.mxu0 %v4789_v37  ;;  %4794 = vmatprep.subr.bf16.mxu1 %v5680_v60 }
 0x168   : > { %4526 = vmatprep.mubr.msk.f32.mxu1 %vm659_vm1, %v5669_v51 }
 0x169   : > { %4527 = vmatmul.mubr.msk.f32.vlgmr.msra.gmra.mrb[14].mxu1 %vm659_vm1, %v5675_v55 }
 0x16a   : > { %4796 = vmatpush3.bf16.msra.mxu1 %v5680_v60  ;;  %4533 = vmatprep.mubr.msk.f32.mxu1 %vm659_vm1, %v5752_v61 }
 0x16b   : > { %4802 = vmatprep.subr.bf16.mxu1 %v5686_v7  ;;  %4583 = vmatmul.mubr.msk.f32.vlgmr.msra.gmra.mrb[22].mxu0 %vm659_vm1, %v5757_v38 }
 0x16c   : > { %4645 = vmatprep.mubr.msk.f32.mxu0 %vm659_vm1, %v5529_v0  ;;  %v2218_v0 = vld [vmem:[%s6115_s4] sm:$0xff] }
 0x16d   : > { %4534 = vmatmul.mubr.msk.f32.vlgmr.msra.gmra.mrb[16].mxu1 %vm659_vm1, %v5763_v41  ;;  %v4825_v44 = vpack.c.bf16 %v2219_v43, %v2218_v0 }
 0x16e   : > { %4804 = vmatpush3.bf16.msra.mxu1 %v5686_v7  ;;  %4547 = vmatprep.mubr.msk.f32.mxu1 %vm659_vm1, %v5772_v54 }
 0x16f   : > { %4810 = vmatprep.subr.bf16.mxu1 %v4777_v13 }
 0x171   : > { %4548 = vmatmul.mubr.msk.f32.vlgmr.msra.gmra.mrb[18].mxu1 %vm659_vm1, %v5783_v58 }
 0x172   : > { %4812 = vmatpush3.bf16.msra.mxu1 %v4777_v13  ;;  %4561 = vmatprep.mubr.msk.f32.mxu1 %vm659_vm1, %v5790_v26 }
 0x173   : > { %4818 = vmatprep.subr.bf16.mxu1 %v4785_v23 }
 0x175   : > { %4562 = vmatmul.mubr.msk.f32.vlgmr.msra.gmra.mrb[20].mxu1 %vm659_vm1, %v5802_v29 }
 0x176   : > { %4820 = vmatpush3.bf16.msra.mxu1 %v4785_v23  ;;  %4575 = vmatprep.mubr.msk.f32.mxu1 %vm659_vm1, %v5808_v40 }
 0x177   : > { %4826 = vmatprep.subr.bf16.mxu1 %v4825_v44 }
 0x179   : > { %4576 = vmatmul.mubr.msk.f32.vlgmr.msra.gmra.mrb[22].mxu1 %vm659_vm1, %v5814_v47 }
 0x17a   : > { %4828 = vmatpush3.bf16.msra.mxu1 %v4825_v44 }
 0x17b   : > { %4830 = vmatprep.subr.bf16.mxu1 %v4829_v48 }
 0x17e   : > { %4832 = vmatpush3.bf16.msra.mxu1 %v4829_v48 }
 0x220   : > { %v4479_v36 = vpop.f32.mrb[0].mxu1 }
 0x221   : > { %v962_v50 = vpop.f32.mrb[1].mxu1  ;;  %v2187_v57 = vmax.f32 %v4479_v36, 0.0 }
 0x222   : > { %v2186_v52 = vmax.f32 %v962_v50, 0.0 }
 0x224   : > { %v4486_v59 = vpop.f32.mrb[2].mxu1  ;;  %4593 = vmatprep.mubr.msk.f32.mxu1 %vm696_vm0, %v2186_v52 }
 0x225   : > { %v1043_v60 = vpop.f32.mrb[3].mxu1  ;;  %4594 = vmatmul.mubr.msk.f32.vlgmr.msra.gmra.mrb[24].mxu1 %vm696_vm0, %v2187_v57  ;;  %v2189_v2 = vmax.f32 %v4486_v59, 0.0 }
 0x226   : > { %v2188_v62 = vmax.f32 %v1043_v60, 0.0  ;;  %v4542_v1 = vpop.f32.mrb[16].mxu0 }
 0x227   : > { %v1691_v3 = vpop.f32.mrb[17].mxu0 }
 0x228   : > { %v4493_v4 = vpop.f32.mrb[4].mxu1  ;;  %4596 = vmatprep.mubr.msk.f32.mxu1 %vm696_vm0, %v2188_v62 }
 0x229   : > { %v1124_v7 = vpop.f32.mrb[5].mxu1  ;;  %4597 = vmatmul.mubr.msk.f32.gmra.mrb[26].mxu1 %vm696_vm0, %v2189_v2  ;;  %v2191_v11 = vmax.f32 %v4493_v4, 0.0 }
 0x22a   : > { %v2190_v10 = vmax.f32 %v1124_v7, 0.0 }
 0x22c   : > { %v4500_v12 = vpop.f32.mrb[6].mxu1  ;;  %4599 = vmatprep.mubr.msk.f32.mxu1 %vm696_vm0, %v2190_v10  ;;  %v2204_v10 = vmax.f32 %v1691_v3, 0.0 }
 0x22d   : > { %v1205_v15 = vpop.f32.mrb[7].mxu1  ;;  %4600 = vmatmul.mubr.msk.f32.gmra.mrb[28].mxu1 %vm696_vm0, %v2191_v11  ;;  %v2193_v19 = vmax.f32 %v4500_v12, 0.0 }
 0x22e   : > { %v2192_v17 = vmax.f32 %v1205_v15, 0.0  ;;  %v4556_v13 = vpop.f32.mrb[18].mxu0 }
 0x22f   : > { %v1853_v20 = vpop.f32.mrb[19].mxu0 }
 0x230   : > { %v4507_v21 = vpop.f32.mrb[8].mxu1  ;;  %4602 = vmatprep.mubr.msk.f32.mxu1 %vm696_vm0, %v2192_v17 }
 0x231   : > { %v1286_v31 = vpop.f32.mrb[9].mxu1  ;;  %4603 = vmatmul.mubr.msk.f32.gmra.mrb[30].mxu1 %vm696_vm0, %v2193_v19  ;;  %v2195_v23 = vmax.f32 %v4507_v21, 0.0  ;;  %v2205_v19 = vmax.f32 %v4542_v1, 0.0 }
 0x232   : > { %v2194_v53 = vmax.f32 %v1286_v31, 0.0 }
 0x234   : > { %v4514_v28 = vpop.f32.mrb[10].mxu1  ;;  %4605 = vmatprep.mubr.msk.f32.mxu1 %vm696_vm0, %v2194_v53  ;;  %v2208_v53 = vmax.f32 %v1853_v20, 0.0 }
 0x235   : > { %v1367_v33 = vpop.f32.mrb[11].mxu1  ;;  %4606 = vmatmul.mubr.msk.f32.gmra.mrb[32].mxu1 %vm696_vm0, %v2195_v23  ;;  %v2197_v43 = vmax.f32 %v4514_v28, 0.0 }
 0x236   : > { %v2196_v37 = vmax.f32 %v1367_v33, 0.0  ;;  %v4570_v0 = vpop.f32.mrb[20].mxu0 }
 0x237   : > { %v2015_v44 = vpop.f32.mrb[21].mxu0 }
 0x238   : > { %v4521_v46 = vpop.f32.mrb[12].mxu1  ;;  %4608 = vmatprep.mubr.msk.f32.mxu1 %vm696_vm0, %v2196_v37  ;;  %v2209_v37 = vmax.f32 %v4556_v13, 0.0  ;;  %v2212_v1 = vmax.f32 %v2015_v44, 0.0 }
 0x239   : > { %v1448_v22 = vpop.f32.mrb[13].mxu1  ;;  %4609 = vmatmul.mubr.msk.f32.gmra.mrb[34].mxu1 %vm696_vm0, %v2197_v43  ;;  %v2199_v36 = vmax.f32 %v4521_v46, 0.0  ;;  %v2213_v46 = vmax.f32 %v4570_v0, 0.0 }
 0x23a   : > { %v2198_v48 = vmax.f32 %v1448_v22, 0.0 }
 0x23c   : > { %v4528_v50 = vpop.f32.mrb[14].mxu1  ;;  %4611 = vmatprep.mubr.msk.f32.mxu1 %vm696_vm0, %v2198_v48 }
 0x23d   : > { %v1529_v52 = vpop.f32.mrb[15].mxu1  ;;  %4612 = vmatmul.mubr.msk.f32.gmra.mrb[36].mxu1 %vm696_vm0, %v2199_v36  ;;  %v2201_v60 = vmax.f32 %v4528_v50, 0.0 }
 0x23e   : > { %v2200_v57 = vmax.f32 %v1529_v52, 0.0  ;;  %v4584_v59 = vpop.f32.mrb[22].mxu0 }
 0x23f   : > { %v2177_v62 = vpop.f32.mrb[23].mxu0  ;;  %v2217_v13 = vmax.f32 %v4584_v59, 0.0 }
 0x240   : > { %v4535_v2 = vpop.f32.mrb[16].mxu1  ;;  %4614 = vmatprep.mubr.msk.f32.mxu1 %vm696_vm0, %v2200_v57  ;;  %v2216_v22 = vmax.f32 %v2177_v62, 0.0 }
 0x241   : > { %v1610_v4 = vpop.f32.mrb[17].mxu1  ;;  %4615 = vmatmul.mubr.msk.f32.gmra.mrb[38].mxu1 %vm696_vm0, %v2201_v60  ;;  %v2203_v11 = vmax.f32 %v4535_v2, 0.0 }
 0x242   : > { %v2202_v7 = vmax.f32 %v1610_v4, 0.0 }
 0x244   : > { %4617 = vmatprep.mubr.msk.f32.mxu1 %vm696_vm0, %v2202_v7  ;;  %v4549_v12 = vpop.f32.mrb[18].mxu1 }
 0x245   : > { %4618 = vmatmul.mubr.msk.f32.gmra.mrb[40].mxu1 %vm696_vm0, %v2203_v11  ;;  %v1772_v15 = vpop.f32.mrb[19].mxu1  ;;  %v2207_v23 = vmax.f32 %v4549_v12, 0.0 }
 0x246   : > { %4620 = vmatprep.mubr.msk.f32.mxu1 %vm696_vm0, %v2204_v10  ;;  %v2206_v17 = vmax.f32 %v1772_v15, 0.0 }
 0x248   : > { %v4563_v21 = vpop.f32.mrb[20].mxu1 }
 0x249   : > { %4621 = vmatmul.mubr.msk.f32.gmra.mrb[42].mxu1 %vm696_vm0, %v2205_v19  ;;  %v1934_v31 = vpop.f32.mrb[21].mxu1  ;;  %v2211_v43 = vmax.f32 %v4563_v21, 0.0 }
 0x24a   : > { %4623 = vmatprep.mubr.msk.f32.mxu1 %vm696_vm0, %v2206_v17  ;;  %v2210_v33 = vmax.f32 %v1934_v31, 0.0 }
 0x24c   : > { %v4577_v3 = vpop.f32.mrb[22].mxu1 }
 0x24d   : > { %4624 = vmatmul.mubr.msk.f32.gmra.mrb[44].mxu1 %vm696_vm0, %v2207_v23  ;;  %v2096_v28 = vpop.f32.mrb[23].mxu1  ;;  %v2215_v48 = vmax.f32 %v4577_v3, 0.0 }
 0x24e   : > { %4626 = vmatprep.mubr.msk.f32.mxu1 %vm696_vm0, %v2208_v53  ;;  %v2214_v20 = vmax.f32 %v2096_v28, 0.0 }
 0x251   : > { %4627 = vmatmul.mubr.msk.f32.gmra.mrb[46].mxu1 %vm696_vm0, %v2209_v37 }
 0x252   : > { %4629 = vmatprep.mubr.msk.f32.mxu1 %vm696_vm0, %v2210_v33 }
 0x255   : > { %4630 = vmatmul.mubr.msk.f32.gmra.mrb[48].mxu1 %vm696_vm0, %v2211_v43 }
 0x256   : > { %4632 = vmatprep.mubr.msk.f32.mxu1 %vm696_vm0, %v2212_v1 }
 0x259   : > { %4633 = vmatmul.mubr.msk.f32.gmra.mrb[50].mxu1 %vm696_vm0, %v2213_v46 }
 0x25a   : > { %4635 = vmatprep.mubr.msk.f32.mxu1 %vm696_vm0, %v2214_v20 }
 0x25d   : > { %4636 = vmatmul.mubr.msk.f32.gmra.mrb[52].mxu1 %vm696_vm0, %v2215_v48 }
 0x25e   : > { %4638 = vmatprep.mubr.msk.f32.mxu1 %vm696_vm0, %v2216_v22 }
 0x261   : > { %4639 = vmatmul.mubr.msk.f32.gmra.mrb[54].mxu1 %vm696_vm0, %v2217_v13 }
 0x2f8   : > { %v4595_v44 = vpop.f32.mrb[24].mxu1 }
 0x2f9   : > { %v2384_v36 = vpop.f32.mrb[25].mxu1 }
 0x2fa   : > { %v4833_v50 = vpack.c.bf16 %v4595_v44, %v2384_v36 }
 0x2fc   : > { %v4598_v52 = vpop.f32.mrb[26].mxu1  ;;  %4834 = vmatprep.subr.bf16.mxu0 %v4833_v50 }
 0x2fd   : > { %v2394_v57 = vpop.f32.mrb[27].mxu1  ;;  %4836 = vmatpush3.bf16.msra.mxu0 %v4833_v50 }
 0x2fe   : > { %v4837_v0 = vpack.c.bf16 %v4598_v52, %v2394_v57 }
 0x300   : > { %v4601_v60 = vpop.f32.mrb[28].mxu1  ;;  %4646 = vmatmul.mubr.msk.f32.vlgmr.msra.gmra.mrb[24].mxu0 %vm659_vm1, %v5540_v6  ;;  %4838 = vmatprep.subr.bf16.mxu0 %v4837_v0 }
 0x301   : > { %v2404_v62 = vpop.f32.mrb[29].mxu1  ;;  %4840 = vmatpush3.bf16.msra.mxu0 %v4837_v0  ;;  %4652 = vmatprep.mubr.msk.f32.mxu0 %vm659_vm1, %v5549_v18 }
 0x302   : > { %v4841_v59 = vpack.c.bf16 %v4601_v60, %v2404_v62 }
 0x304   : > { %v4604_v2 = vpop.f32.mrb[30].mxu1  ;;  %4653 = vmatmul.mubr.msk.f32.vlgmr.msra.gmra.mrb[26].mxu0 %vm659_vm1, %v5555_v24  ;;  %4842 = vmatprep.subr.bf16.mxu0 %v4841_v59 }
 0x305   : > { %v2414_v4 = vpop.f32.mrb[31].mxu1  ;;  %4844 = vmatpush3.bf16.msra.mxu0 %v4841_v59  ;;  %4659 = vmatprep.mubr.msk.f32.mxu0 %vm659_vm1, %v5567_v32 }
 0x306   : > { %v4845_v7 = vpack.c.bf16 %v4604_v2, %v2414_v4 }
 0x308   : > { %v4607_v10 = vpop.f32.mrb[32].mxu1  ;;  %4660 = vmatmul.mubr.msk.f32.vlgmr.msra.gmra.mrb[28].mxu0 %vm659_vm1, %v5576_v39  ;;  %4846 = vmatprep.subr.bf16.mxu0 %v4845_v7 }
 0x309   : > { %v2424_v6 = vpop.f32.mrb[33].mxu1  ;;  %4848 = vmatpush3.bf16.msra.mxu0 %v4845_v7  ;;  %4666 = vmatprep.mubr.msk.f32.mxu0 %vm659_vm1, %v5594_v30 }
 0x30a   : > { %v4849_v18 = vpack.c.bf16 %v4607_v10, %v2424_v6 }
 0x30c   : > { %v4610_v11 = vpop.f32.mrb[34].mxu1  ;;  %4667 = vmatmul.mubr.msk.f32.vlgmr.msra.gmra.mrb[30].mxu0 %vm659_vm1, %v5606_v42  ;;  %4850 = vmatprep.subr.bf16.mxu0 %v4849_v18 }
 0x30d   : > { %v2434_v24 = vpop.f32.mrb[35].mxu1  ;;  %4852 = vmatpush3.bf16.msra.mxu0 %v4849_v18  ;;  %4673 = vmatprep.mubr.msk.f32.mxu0 %vm659_vm1, %v5615_v49 }
 0x30e   : > { %v4853_v32 = vpack.c.bf16 %v4610_v11, %v2434_v24 }
 0x310   : > { %v4613_v12 = vpop.f32.mrb[36].mxu1  ;;  %4674 = vmatmul.mubr.msk.f32.vlgmr.msra.gmra.mrb[32].mxu0 %vm659_vm1, %v5624_v56  ;;  %4854 = vmatprep.subr.bf16.mxu0 %v4853_v32 }
 0x311   : > { %v2444_v39 = vpop.f32.mrb[37].mxu1  ;;  %4856 = vmatpush3.bf16.msra.mxu0 %v4853_v32  ;;  %4680 = vmatprep.mubr.msk.f32.mxu0 %vm659_vm1, %v5633_v63 }
 0x312   : > { %v4857_v30 = vpack.c.bf16 %v4613_v12, %v2444_v39 }
 0x314   : > { %v4616_v15 = vpop.f32.mrb[38].mxu1  ;;  %4681 = vmatmul.mubr.msk.f32.vlgmr.msra.gmra.mrb[34].mxu0 %vm659_vm1, %v5639_v5  ;;  %4858 = vmatprep.subr.bf16.mxu0 %v4857_v30 }
 0x315   : > { %v2454_v42 = vpop.f32.mrb[39].mxu1  ;;  %4860 = vmatpush3.bf16.msra.mxu0 %v4857_v30  ;;  %4687 = vmatprep.mubr.msk.f32.mxu0 %vm659_vm1, %v5648_v35 }
 0x316   : > { %v4861_v49 = vpack.c.bf16 %v4616_v15, %v2454_v42 }
 0x318   : > { %v4619_v17 = vpop.f32.mrb[40].mxu1  ;;  %4688 = vmatmul.mubr.msk.f32.vlgmr.msra.gmra.mrb[36].mxu0 %vm659_vm1, %v5660_v45  ;;  %4862 = vmatprep.subr.bf16.mxu0 %v4861_v49 }
 0x319   : > { %v2464_v56 = vpop.f32.mrb[41].mxu1  ;;  %4864 = vmatpush3.bf16.msra.mxu0 %v4861_v49  ;;  %4694 = vmatprep.mubr.msk.f32.mxu0 %vm659_vm1, %v5669_v51 }
 0x31a   : > { %v4865_v63 = vpack.c.bf16 %v4619_v17, %v2464_v56 }
 0x31c   : > { %v4622_v19 = vpop.f32.mrb[42].mxu1  ;;  %4695 = vmatmul.mubr.msk.f32.vlgmr.msra.gmra.mrb[38].mxu0 %vm659_vm1, %v5675_v55  ;;  %4866 = vmatprep.subr.bf16.mxu0 %v4865_v63 }
 0x31d   : > { %v2474_v5 = vpop.f32.mrb[43].mxu1  ;;  %4868 = vmatpush3.bf16.msra.mxu0 %v4865_v63  ;;  %4701 = vmatprep.mubr.msk.f32.mxu0 %vm659_vm1, %v5752_v61 }
 0x31e   : > { %v4869_v35 = vpack.c.bf16 %v4622_v19, %v2474_v5 }
 0x320   : > { %v4625_v21 = vpop.f32.mrb[44].mxu1  ;;  %4702 = vmatmul.mubr.msk.f32.vlgmr.msra.gmra.mrb[40].mxu0 %vm659_vm1, %v5763_v41  ;;  %4870 = vmatprep.subr.bf16.mxu0 %v4869_v35 }
 0x321   : > { %v2484_v45 = vpop.f32.mrb[45].mxu1  ;;  %4872 = vmatpush3.bf16.msra.mxu0 %v4869_v35  ;;  %4708 = vmatprep.mubr.msk.f32.mxu0 %vm659_vm1, %v5570_v34 }
 0x322   : > { %v4873_v51 = vpack.c.bf16 %v4625_v21, %v2484_v45 }
 0x324   : > { %v4628_v31 = vpop.f32.mrb[46].mxu1  ;;  %4709 = vmatmul.mubr.msk.f32.vlgmr.msra.gmra.mrb[42].mxu0 %vm659_vm1, %v5692_v8  ;;  %4874 = vmatprep.subr.bf16.mxu0 %v4873_v51 }
 0x325   : > { %v2494_v55 = vpop.f32.mrb[47].mxu1  ;;  %4876 = vmatpush3.bf16.msra.mxu0 %v4873_v51  ;;  %4715 = vmatprep.mubr.msk.f32.mxu0 %vm659_vm1, %v5772_v54 }
 0x326   : > { %v4877_v61 = vpack.c.bf16 %v4628_v31, %v2494_v55 }
 0x328   : > { %v4631_v53 = vpop.f32.mrb[48].mxu1  ;;  %4716 = vmatmul.mubr.msk.f32.vlgmr.msra.gmra.mrb[44].mxu0 %vm659_vm1, %v5783_v58  ;;  %4878 = vmatprep.subr.bf16.mxu0 %v4877_v61 }
 0x329   : > { %v2504_v41 = vpop.f32.mrb[49].mxu1  ;;  %4880 = vmatpush3.bf16.msra.mxu0 %v4877_v61  ;;  %4722 = vmatprep.mubr.msk.f32.mxu0 %vm659_vm1, %v5696_v9 }
 0x32a   : > { %v4881_v34 = vpack.c.bf16 %v4631_v53, %v2504_v41 }
 0x32c   : > { %v4634_v23 = vpop.f32.mrb[50].mxu1  ;;  %4723 = vmatmul.mubr.msk.f32.vlgmr.msra.gmra.mrb[46].mxu0 %vm659_vm1, %v5714_v14  ;;  %4882 = vmatprep.subr.bf16.mxu0 %v4881_v34 }
 0x32d   : > { %v2514_v8 = vpop.f32.mrb[51].mxu1  ;;  %4884 = vmatpush3.bf16.msra.mxu0 %v4881_v34  ;;  %4729 = vmatprep.mubr.msk.f32.mxu0 %vm659_vm1, %v5790_v26 }
 0x32e   : > { %v4885_v54 = vpack.c.bf16 %v4634_v23, %v2514_v8 }
 0x330   : > { %v4637_v3 = vpop.f32.mrb[52].mxu1  ;;  %4730 = vmatmul.mubr.msk.f32.vlgmr.msra.gmra.mrb[48].mxu0 %vm659_vm1, %v5802_v29  ;;  %4886 = vmatprep.subr.bf16.mxu0 %v4885_v54 }
 0x331   : > { %v2524_v58 = vpop.f32.mrb[53].mxu1  ;;  %4888 = vmatpush3.bf16.msra.mxu0 %v4885_v54  ;;  %4736 = vmatprep.mubr.msk.f32.mxu0 %vm659_vm1, %v5718_v16 }
 0x332   : > { %v4889_v9 = vpack.c.bf16 %v4637_v3, %v2524_v58 }
 0x334   : > { %v4640_v14 = vpop.f32.mrb[54].mxu1  ;;  %4737 = vmatmul.mubr.msk.f32.vlgmr.msra.gmra.mrb[50].mxu0 %vm659_vm1, %v5734_v25  ;;  %4890 = vmatprep.subr.bf16.mxu0 %v4889_v9 }
 0x335   : > { %v2534_v26 = vpop.f32.mrb[55].mxu1  ;;  %4892 = vmatpush3.bf16.msra.mxu0 %v4889_v9  ;;  %4743 = vmatprep.mubr.msk.f32.mxu0 %vm659_vm1, %v5808_v40 }
 0x336   : > { %v4893_v29 = vpack.c.bf16 %v4640_v14, %v2534_v26 }
 0x338   : > { %4744 = vmatmul.mubr.msk.f32.vlgmr.msra.gmra.mrb[52].mxu0 %vm659_vm1, %v5814_v47  ;;  %4894 = vmatprep.subr.bf16.mxu0 %v4893_v29 }
 0x339   : > { %4896 = vmatpush3.bf16.msra.mxu0 %v4893_v29  ;;  %4750 = vmatprep.mubr.msk.f32.mxu0 %vm659_vm1, %v5738_v27 }
 0x33c   : > { %4751 = vmatmul.mubr.msk.f32.vlgmr.msra.gmra.mrb[54].mxu0 %vm659_vm1, %v5757_v38 }
 0x33d   : > { %5156 = shalt.err (!%p5153_p9)
}
 0x33e   : > { %s5157_s30 = scalar_lea.hbm %s5925_s26, 2048  ;;  %s5161_s28 = scalar_lea.hbm %s6116_s5, 4096 }
 0x33f   : > { %p5158_p10 = scmp.ne.s32.totalorder %s5925_s26, %s5157_s30  ;;  %p5162_p11 = scmp.lt.u32.totalorder %s5925_s26, %s6116_s5 }
 0x340   : > { %p5163_p4 = scmp.lt.u32.totalorder %s5161_s28, %s5157_s30  ;;  %p5165_p5 = scmp.lt.u32.totalorder %s5157_s30, %s5925_s26 }
 0x341   : > { %p5159_p0 = pnand %p5158_p10, %p6127_p6 }
 0x342   : > { %p5164_p7 = por %p5163_p4, %p5162_p11 }
 0x343   : > { %p5160_p3 = pneg %p5159_p0 }
 0x344   : > { %p5166_p8 = por %p5165_p5, %p5164_p7 }
 0x346   : > { %p5167_p12 = pnand %p5166_p8, %p5160_p3 }
 0x348   : > { %5170 = shalt.err (!%p5167_p12)
}
 0x349   : > { %s5226_s15 = smov 128   ;;  %s5227_s18 = smov 8   ;;  %vm3743_vm2 = vcmask 64512  }
 0x34a   : > { %4910 = dma.vmem_to_hbm [thread:$0]  (%p6127_p6), %s5927_s12, 2048, %s5925_s26, %s3777_s8, %s5226_s15, %s5226_s15, %s5227_s18  }
 0x34b   : > { %s5955_s11 = scalar_lea.vmem [#allocation9], %s4120_s7  ;;  %s4256_s20 = sshll.u32 (%p6127_p6), %s5284_s25, 7 }
 0x34c   : > { %s6030_s26 = scalar_lea.vmem (%p6127_p6), %s6117_s6, %s4256_s20 }
 0x3d3   : > { %v4647_v16 = vpop.f32.mrb[24].mxu0 }
 0x3d4   : > { %3745 = vst.msk [vmem:[%s5955_s11 + $0x8] sm:$0xff] %vm3743_vm2, %v4647_v16  ;;  %v2609_v25 = vpop.f32.mrb[25].mxu0 }
 0x3d5   : > { %3744 = vst.msk [vmem:[%s5955_s11] sm:$0xff] %vm3743_vm2, %v2609_v25 }
 0x3d7   : > { %v4654_v27 = vpop.f32.mrb[26].mxu0 }
 0x3d8   : > { %3747 = vst.msk [vmem:[%s5955_s11 + $0x18] sm:$0xff] %vm3743_vm2, %v4654_v27  ;;  %v2684_v38 = vpop.f32.mrb[27].mxu0 }
 0x3d9   : > { %3746 = vst.msk [vmem:[%s5955_s11 + $0x10] sm:$0xff] %vm3743_vm2, %v2684_v38 }
 0x3db   : > { %v4661_v40 = vpop.f32.mrb[28].mxu0  ;;  %v3900_v32 = vld [vmem:[%s5955_s11 + $0x8] sm:$0xff] (%p6127_p6) }
 0x3dc   : > { %3749 = vst.msk [vmem:[%s5955_s11 + $0x28] sm:$0xff] %vm3743_vm2, %v4661_v40  ;;  %v2759_v47 = vpop.f32.mrb[29].mxu0  ;;  %v3898_v24 = vld [vmem:[%s5955_s11] sm:$0xff] (%p6127_p6)  ;;  %3901 = vst [vmem:[%s6030_s26 + $0x8] sm:$0xff] (%p6127_p6), %v3900_v32 }
 0x3dd   : > { %3748 = vst.msk [vmem:[%s5955_s11 + $0x20] sm:$0xff] %vm3743_vm2, %v2759_v47  ;;  %3899 = vst [vmem:[%s6030_s26] sm:$0xff] (%p6127_p6), %v3898_v24 }
 0x3df   : > { %v4668_v28 = vpop.f32.mrb[30].mxu0  ;;  %v3904_v39 = vld [vmem:[%s5955_s11 + $0x18] sm:$0xff] (%p6127_p6) }
 0x3e0   : > { %3751 = vst.msk [vmem:[%s5955_s11 + $0x38] sm:$0xff] %vm3743_vm2, %v4668_v28  ;;  %v2834_v33 = vpop.f32.mrb[31].mxu0  ;;  %v3902_v12 = vld [vmem:[%s5955_s11 + $0x10] sm:$0xff] (%p6127_p6)  ;;  %3905 = vst [vmem:[%s6030_s26 + $0x18] sm:$0xff] (%p6127_p6), %v3904_v39 }
 0x3e1   : > { %3750 = vst.msk [vmem:[%s5955_s11 + $0x30] sm:$0xff] %vm3743_vm2, %v2834_v33  ;;  %3903 = vst [vmem:[%s6030_s26 + $0x10] sm:$0xff] (%p6127_p6), %v3902_v12 }
 0x3e3   : > { %v4675_v37 = vpop.f32.mrb[32].mxu0  ;;  %v3908_v15 = vld [vmem:[%s5955_s11 + $0x28] sm:$0xff] (%p6127_p6) }
 0x3e4   : > { %3753 = vst.msk [vmem:[%s5955_s11 + $0x48] sm:$0xff] %vm3743_vm2, %v4675_v37  ;;  %v2909_v1 = vpop.f32.mrb[33].mxu0  ;;  %v3906_v30 = vld [vmem:[%s5955_s11 + $0x20] sm:$0xff] (%p6127_p6)  ;;  %3909 = vst [vmem:[%s6030_s26 + $0x28] sm:$0xff] (%p6127_p6), %v3908_v15 }
 0x3e5   : > { %3752 = vst.msk [vmem:[%s5955_s11 + $0x40] sm:$0xff] %vm3743_vm2, %v2909_v1  ;;  %3907 = vst [vmem:[%s6030_s26 + $0x20] sm:$0xff] (%p6127_p6), %v3906_v30 }
 0x3e7   : > { %v4682_v43 = vpop.f32.mrb[34].mxu0  ;;  %v3912_v49 = vld [vmem:[%s5955_s11 + $0x38] sm:$0xff] (%p6127_p6) }
 0x3e8   : > { %3755 = vst.msk [vmem:[%s5955_s11 + $0x58] sm:$0xff] %vm3743_vm2, %v4682_v43  ;;  %v2984_v20 = vpop.f32.mrb[35].mxu0  ;;  %v3910_v42 = vld [vmem:[%s5955_s11 + $0x30] sm:$0xff] (%p6127_p6)  ;;  %3913 = vst [vmem:[%s6030_s26 + $0x38] sm:$0xff] (%p6127_p6), %v3912_v49 }
 0x3e9   : > { %3754 = vst.msk [vmem:[%s5955_s11 + $0x50] sm:$0xff] %vm3743_vm2, %v2984_v20  ;;  %3911 = vst [vmem:[%s6030_s26 + $0x30] sm:$0xff] (%p6127_p6), %v3910_v42 }
 0x3eb   : > { %v4689_v46 = vpop.f32.mrb[36].mxu0  ;;  %v3916_v56 = vld [vmem:[%s5955_s11 + $0x48] sm:$0xff] (%p6127_p6) }
 0x3ec   : > { %3757 = vst.msk [vmem:[%s5955_s11 + $0x68] sm:$0xff] %vm3743_vm2, %v4689_v46  ;;  %v3059_v22 = vpop.f32.mrb[37].mxu0  ;;  %v3914_v17 = vld [vmem:[%s5955_s11 + $0x40] sm:$0xff] (%p6127_p6)  ;;  %3917 = vst [vmem:[%s6030_s26 + $0x48] sm:$0xff] (%p6127_p6), %v3916_v56 }
 0x3ed   : > { %3756 = vst.msk [vmem:[%s5955_s11 + $0x60] sm:$0xff] %vm3743_vm2, %v3059_v22  ;;  %3915 = vst [vmem:[%s6030_s26 + $0x40] sm:$0xff] (%p6127_p6), %v3914_v17 }
 0x3ef   : > { %v4696_v48 = vpop.f32.mrb[38].mxu0  ;;  %v3920_v19 = vld [vmem:[%s5955_s11 + $0x58] sm:$0xff] (%p6127_p6) }
 0x3f0   : > { %3759 = vst.msk [vmem:[%s5955_s11 + $0x78] sm:$0xff] %vm3743_vm2, %v4696_v48  ;;  %v3134_v13 = vpop.f32.mrb[39].mxu0  ;;  %v3918_v63 = vld [vmem:[%s5955_s11 + $0x50] sm:$0xff] (%p6127_p6)  ;;  %3921 = vst [vmem:[%s6030_s26 + $0x58] sm:$0xff] (%p6127_p6), %v3920_v19 }
 0x3f1   : > { %3758 = vst.msk [vmem:[%s5955_s11 + $0x70] sm:$0xff] %vm3743_vm2, %v3134_v13  ;;  %3919 = vst [vmem:[%s6030_s26 + $0x50] sm:$0xff] (%p6127_p6), %v3918_v63 }
 0x3f3   : > { %v4703_v44 = vpop.f32.mrb[40].mxu0  ;;  %v3924_v35 = vld [vmem:[%s5955_s11 + $0x68] sm:$0xff] (%p6127_p6) }
 0x3f4   : > { %3761 = vst.msk [vmem:[%s5955_s11 + $0x88] sm:$0xff] %vm3743_vm2, %v4703_v44  ;;  %v3209_v36 = vpop.f32.mrb[41].mxu0  ;;  %v3922_v5 = vld [vmem:[%s5955_s11 + $0x60] sm:$0xff] (%p6127_p6)  ;;  %3925 = vst [vmem:[%s6030_s26 + $0x68] sm:$0xff] (%p6127_p6), %v3924_v35 }
 0x3f5   : > { %3760 = vst.msk [vmem:[%s5955_s11 + $0x80] sm:$0xff] %vm3743_vm2, %v3209_v36  ;;  %3923 = vst [vmem:[%s6030_s26 + $0x60] sm:$0xff] (%p6127_p6), %v3922_v5 }
 0x3f7   : > { %v4710_v50 = vpop.f32.mrb[42].mxu0  ;;  %v3928_v45 = vld [vmem:[%s5955_s11 + $0x78] sm:$0xff] (%p6127_p6) }
 0x3f8   : > { %3763 = vst.msk [vmem:[%s5955_s11 + $0x98] sm:$0xff] %vm3743_vm2, %v4710_v50  ;;  %v3284_v52 = vpop.f32.mrb[43].mxu0  ;;  %v3926_v21 = vld [vmem:[%s5955_s11 + $0x70] sm:$0xff] (%p6127_p6)  ;;  %3929 = vst [vmem:[%s6030_s26 + $0x78] sm:$0xff] (%p6127_p6), %v3928_v45 }
 0x3f9   : > { %3762 = vst.msk [vmem:[%s5955_s11 + $0x90] sm:$0xff] %vm3743_vm2, %v3284_v52  ;;  %3927 = vst [vmem:[%s6030_s26 + $0x70] sm:$0xff] (%p6127_p6), %v3926_v21 }
 0x3fb   : > { %v4717_v57 = vpop.f32.mrb[44].mxu0  ;;  %v3932_v31 = vld [vmem:[%s5955_s11 + $0x88] sm:$0xff] (%p6127_p6) }
 0x3fc   : > { %3765 = vst.msk [vmem:[%s5955_s11 + $0xa8] sm:$0xff] %vm3743_vm2, %v4717_v57  ;;  %v3359_v0 = vpop.f32.mrb[45].mxu0  ;;  %v3930_v51 = vld [vmem:[%s5955_s11 + $0x80] sm:$0xff] (%p6127_p6)  ;;  %3933 = vst [vmem:[%s6030_s26 + $0x108] sm:$0xff] (%p6127_p6), %v3932_v31 }
 0x3fd   : > { %3764 = vst.msk [vmem:[%s5955_s11 + $0xa0] sm:$0xff] %vm3743_vm2, %v3359_v0  ;;  %3931 = vst [vmem:[%s6030_s26 + $0x100] sm:$0xff] (%p6127_p6), %v3930_v51 }
 0x3ff   : > { %v4724_v60 = vpop.f32.mrb[46].mxu0  ;;  %v3936_v61 = vld [vmem:[%s5955_s11 + $0x98] sm:$0xff] (%p6127_p6) }
 0x400   : > { %3767 = vst.msk [vmem:[%s5955_s11 + $0xb8] sm:$0xff] %vm3743_vm2, %v4724_v60  ;;  %v3434_v62 = vpop.f32.mrb[47].mxu0  ;;  %v3934_v55 = vld [vmem:[%s5955_s11 + $0x90] sm:$0xff] (%p6127_p6)  ;;  %3937 = vst [vmem:[%s6030_s26 + $0x118] sm:$0xff] (%p6127_p6), %v3936_v61 }
 0x401   : > { %3766 = vst.msk [vmem:[%s5955_s11 + $0xb0] sm:$0xff] %vm3743_vm2, %v3434_v62  ;;  %3935 = vst [vmem:[%s6030_s26 + $0x110] sm:$0xff] (%p6127_p6), %v3934_v55 }
 0x403   : > { %v4731_v59 = vpop.f32.mrb[48].mxu0  ;;  %v3940_v41 = vld [vmem:[%s5955_s11 + $0xa8] sm:$0xff] (%p6127_p6) }
 0x404   : > { %3769 = vst.msk [vmem:[%s5955_s11 + $0xc8] sm:$0xff] %vm3743_vm2, %v4731_v59  ;;  %v3509_v2 = vpop.f32.mrb[49].mxu0  ;;  %v3938_v53 = vld [vmem:[%s5955_s11 + $0xa0] sm:$0xff] (%p6127_p6)  ;;  %3941 = vst [vmem:[%s6030_s26 + $0x128] sm:$0xff] (%p6127_p6), %v3940_v41 }
 0x405   : > { %3768 = vst.msk [vmem:[%s5955_s11 + $0xc0] sm:$0xff] %vm3743_vm2, %v3509_v2  ;;  %3939 = vst [vmem:[%s6030_s26 + $0x120] sm:$0xff] (%p6127_p6), %v3938_v53 }
 0x407   : > { %v4738_v4 = vpop.f32.mrb[50].mxu0  ;;  %v3944_v23 = vld [vmem:[%s5955_s11 + $0xb8] sm:$0xff] (%p6127_p6) }
 0x408   : > { %3771 = vst.msk [vmem:[%s5955_s11 + $0xd8] sm:$0xff] %vm3743_vm2, %v4738_v4  ;;  %v3584_v7 = vpop.f32.mrb[51].mxu0  ;;  %v3942_v34 = vld [vmem:[%s5955_s11 + $0xb0] sm:$0xff] (%p6127_p6)  ;;  %3945 = vst [vmem:[%s6030_s26 + $0x138] sm:$0xff] (%p6127_p6), %v3944_v23 }
 0x409   : > { %3770 = vst.msk [vmem:[%s5955_s11 + $0xd0] sm:$0xff] %vm3743_vm2, %v3584_v7  ;;  %3943 = vst [vmem:[%s6030_s26 + $0x130] sm:$0xff] (%p6127_p6), %v3942_v34 }
 0x40b   : > { %v4745_v10 = vpop.f32.mrb[52].mxu0  ;;  %3804 = sbr.rel (!%p6127_p6) target bundleno = 1050 (0x41a), region = 60  ;;  %v3948_v54 = vld [vmem:[%s5955_s11 + $0xc8] sm:$0xff] (%p6127_p6) }
 0x40c   : > { %3773 = vst.msk [vmem:[%s5955_s11 + $0xe8] sm:$0xff] %vm3743_vm2, %v4745_v10  ;;  %v3659_v6 = vpop.f32.mrb[53].mxu0  ;;  %v3946_v8 = vld [vmem:[%s5955_s11 + $0xc0] sm:$0xff] (%p6127_p6)  ;;  %3949 = vst [vmem:[%s6030_s26 + $0x148] sm:$0xff] (%p6127_p6), %v3948_v54 }
 0x40d   : > { %3772 = vst.msk [vmem:[%s5955_s11 + $0xe0] sm:$0xff] %vm3743_vm2, %v3659_v6  ;;  %3947 = vst [vmem:[%s6030_s26 + $0x140] sm:$0xff] (%p6127_p6), %v3946_v8 }
 0x40f   : > { %v4752_v18 = vpop.f32.mrb[54].mxu0  ;;  %v3952_v58 = vld [vmem:[%s5955_s11 + $0xd8] sm:$0xff] (%p6127_p6) }
 0x410   : > { %3775 = vst.msk [vmem:[%s5955_s11 + $0xf8] sm:$0xff] %vm3743_vm2, %v4752_v18  ;;  %v3734_v11 = vpop.f32.mrb[55].mxu0  ;;  %v3950_v3 = vld [vmem:[%s5955_s11 + $0xd0] sm:$0xff] (%p6127_p6)  ;;  %3953 = vst [vmem:[%s6030_s26 + $0x158] sm:$0xff] (%p6127_p6), %v3952_v58 }
 0x411   : > { %3774 = vst.msk [vmem:[%s5955_s11 + $0xf0] sm:$0xff] %vm3743_vm2, %v3734_v11  ;;  %3951 = vst [vmem:[%s6030_s26 + $0x150] sm:$0xff] (%p6127_p6), %v3950_v3 }
 0x413   : > { %v3956_v14 = vld [vmem:[%s5955_s11 + $0xe8] sm:$0xff] }
 0x414   : > { %v3954_v9 = vld [vmem:[%s5955_s11 + $0xe0] sm:$0xff]  ;;  %3957 = vst [vmem:[%s6030_s26 + $0x168] sm:$0xff] %v3956_v14 }
 0x415   : > { %3955 = vst [vmem:[%s6030_s26 + $0x160] sm:$0xff] %v3954_v9 }
 0x417   : > { %v3960_v29 = vld [vmem:[%s5955_s11 + $0xf8] sm:$0xff] }
 0x418   : > { %v3958_v26 = vld [vmem:[%s5955_s11 + $0xf0] sm:$0xff]  ;;  %3961 = vst [vmem:[%s6030_s26 + $0x178] sm:$0xff] %v3960_v29 }
 0x419   : > { %3959 = vst [vmem:[%s6030_s26 + $0x170] sm:$0xff] %v3958_v26 }
 0x41a PF: > { %s3973_s25 = sand.u32 1, %s5201_s21   ;;  %p6128_p6 = scmp.ne.s32.totalorder %s6125_s10, 0 }
 0x41b   : > { %p6129_p13 = scmp.ge.s32.totalorder %s5213_s24, 2  ;;  %s3974_s9 = scalar_lea.sflag [#allocation4], %s3973_s25 }
 0x41d   : > { %p4913_p1 = pnand %p6129_p13, %p6128_p6 }
 0x41f   : > { %5196 = dma.done.wait (!%p4913_p1), %s3974_s9, 2048  }
 0x420   : > { %5198 = vsyncadd (!%p4913_p1), %s3974_s9, 4294965248  ;;  %s6130_s8 = sld [smem:[#allocation16_spill]]  ;;  %p23_p2 = scmp.ge.s32.totalorder %s5288_s27, 4  }
 0x421   : > { %s6131_s21 = smov %s5205_s22  ;;  %s6132_s22 = smov %s5209_s23 }
 0x422   : > { %s6134_s24 = smov %s5288_s27  ;;  %25 = sbr.rel (!%p23_p2) target bundleno = 9 (0x9), region = 164 }
 0x426   : > { %s6133_s23 = smov %s6130_s8 }
 0x429   :  { %3986 = vsyncpa [#allocation3], 1 }
 0x42a   :  { %3988 = vsyncpa [#allocation3 + $0x1], 1 }
 0x42b   :  { %3989 = vsyncpa [#allocation6], 1 }
 0x42c   :  { %3991 = vsyncpa [#allocation6 + $0x1], 1 }
 0x42d   :  { %3992 = vsyncpa [#allocation4], 1 }
 0x42e   :  { %3994 = vsyncpa [#allocation4 + $0x1], 1 }

</bundles_post_ra>
